<compile_context>
chip_gen: v7x
topology: tpu7x:2x2x1
jax: 0.10.0
libtpu: 0.0.40
codegen_flags: <defaults>
</compile_context>

<pallas_src>
import functools

import numpy as np
import jax
import jax.numpy as jnp
from jax.experimental import pallas as pl
from jax.experimental.pallas import tpu as pltpu


# ------------------------- static tap / parity plan ------------------------- #
def _tap_plan():
    """Static plan shared by the wrapper (weight folding) and kernel (loop order).

    One entry per (tap, parity) contribution:
        (dy, dx, parity, ky_indices, kx_indices)
    parity = 2*ry + rx selects which of the 4 upsampled sub-pixels the
    contribution belongs to; ky/kx_indices are the original 3x3 kernel rows /
    cols that collapse onto this tap for that parity.
    """
    # (offset, parity-bit) -> which original kernel rows/cols collapse here
    sets = {(-1, 0): (0,), (0, 0): (1, 2), (0, 1): (0, 1), (1, 1): (2,)}
    # which parity bits use a given offset
    opts = {-1: (0,), 0: (0, 1), 1: (1,)}
    plan = []
    for dx in (-1, 0, 1):          # dx outer: the 2 unaligned shifts built once
        for dy in (-1, 0, 1):      # dy inner: cheap row-aligned shifts
            for ry in opts[dy]:
                for rx in opts[dx]:
                    plan.append((dy, dx, 2 * ry + rx,
                                 sets[(dy, ry)], sets[(dx, rx)]))
    return tuple(plan)             # 16 entries


# --------------------------------- kernel ----------------------------------- #
def _upsample_conv_kernel(x_ref, w_ref, b_ref, o_ref, *, H, W, plan):
    HW = H * W
    Cout = w_ref.shape[-1]

    xf = x_ref[0].astype(jnp.float32)                     # [HW, Cin]
    Cin = xf.shape[1]

    # Column (W-boundary) masks for the dx = +-1 taps.
    flat = jax.lax.broadcasted_iota(jnp.int32, (HW, 1), 0)
    col = flat % W
    col_valid = {-1: col >= 1, 1: col <= W - 2}

    # Which (weight slot, parity) pairs consume each (dy, dx) tap.
    by_shift = {}
    for k, (dy, dx, par, _, _) in enumerate(plan):
        by_shift.setdefault((dy, dx), []).append((k, par))

    zrow = jnp.zeros((W, Cin), jnp.float32)               # one zero image row
    zone = jnp.zeros((1, Cin), jnp.float32)               # one zero pixel row

    accs = [jnp.zeros((HW, Cout), jnp.float32) for _ in range(4)]

    for dx in (-1, 0, 1):
        # ---- column shift: built once, reused by every dy / parity ---------
        if dx == 0:
            slab = xf
        elif dx == -1:      # value at (yi, xi-1); mask handles xi == 0
            slab = jnp.concatenate([zone, xf[: HW - 1]], axis=0)
            slab = jnp.where(col_valid[-1], slab, 0.0)
        else:               # value at (yi, xi+1); mask handles xi == W-1
            slab = jnp.concatenate([xf[1:], zone], axis=0)
            slab = jnp.where(col_valid[1], slab, 0.0)

        for dy in (-1, 0, 1):
            # ---- row shift: whole rows, sublane-aligned when W % 8 == 0 ----
            if dy == 0:
                tap = slab
            elif dy == -1:  # value at (yi-1, xi+dx); zero rows handle yi == 0
                tap = jnp.concatenate([zrow, slab[: HW - W]], axis=0)
            else:           # value at (yi+1, xi+dx); zero rows handle yi == H-1
                tap = jnp.concatenate([slab[W:], zrow], axis=0)

            tap_bf = tap.astype(jnp.bfloat16)             # bf16 MXU operand
            for k, par in by_shift[(dy, dx)]:
                accs[par] = accs[par] + jnp.dot(
                    tap_bf, w_ref[k], preferred_element_type=jnp.float32)

    # Lane-dense packed store: 4 parities side by side -> [HW, 4*Cout].
    packed = jnp.concatenate(accs, axis=-1) + b_ref[...]
    o_ref[0] = packed.astype(o_ref.dtype)


# --------------------------------- wrapper ---------------------------------- #
@jax.jit
def upsample_forward(x_nchw, w_oihw, bias):
    B, C, H, W = x_nchw.shape
    Cout = w_oihw.shape[0]
    HW = H * W
    plan = _tap_plan()

    # Fold the upsample into the conv weights: one [Cin, Cout] matrix per
    # (tap, parity) contribution, pre-cast to bf16 for the MXU.
    w_hwio = jnp.transpose(w_oihw, (2, 3, 1, 0))          # [3, 3, Cin, Cout]
    w_taps = jnp.stack(
        [sum(w_hwio[ky, kx] for ky in kys for kx in kxs)
         for (_, _, _, kys, kxs) in plan]
    ).astype(jnp.bfloat16)                                # [16, Cin, Cout]
    b_packed = jnp.tile(bias.reshape(1, Cout).astype(jnp.float32), (1, 4))

    x_flat = jnp.transpose(x_nchw, (0, 2, 3, 1)).reshape(B, HW, C)

    out_packed = pl.pallas_call(
        functools.partial(_upsample_conv_kernel, H=H, W=W, plan=plan),
        out_shape=jax.ShapeDtypeStruct((B, HW, 4 * Cout), jnp.float32),
        grid=(B,),
        in_specs=[
            pl.BlockSpec((1, HW, C), lambda i: (i, 0, 0)),
            pl.BlockSpec((len(plan), C, Cout), lambda i: (0, 0, 0)),
            pl.BlockSpec((1, 4 * Cout), lambda i: (0, 0)),
        ],
        out_specs=pl.BlockSpec((1, HW, 4 * Cout), lambda i: (i, 0, 0)),
        compiler_params=pltpu.CompilerParams(dimension_semantics=("parallel",)),
    )(x_flat, w_taps, b_packed)

    # De-interleave the 4 parities back to NCHW [B, C, 2H, 2W]
    # (wrapper-side layout plumbing; out[b, yi*W+xi, (2*ry+rx)*C + c]
    #  -> out[b, c, 2*yi+ry, 2*xi+rx]).
    out = out_packed.reshape(B, H, W, 2, 2, Cout)
    out = jnp.transpose(out, (0, 5, 1, 3, 2, 4)).reshape(B, Cout, 2 * H, 2 * W)
    return out


# ---------------------------- pure-JAX reference ---------------------------- #
def ref_upsample(x, w, bias):
    up = jnp.repeat(jnp.repeat(x, 2, axis=2), 2, axis=3)
    out = jax.lax.conv_general_dilated(
        up, w, window_strides=(1, 1), padding=[(1, 1), (1, 1)],
        dimension_numbers=("NCHW", "OIHW", "NCHW"))
    return out + bias[None, :, None, None]


# ------------------------------------ main ----------------------------------- #
if __name__ == "__main__":
    B, C, H, W = 2, 128, 16, 16
    key = jax.random.PRNGKey(0)
    kx, kw, kb = jax.random.split(key, 3)
    x = jax.random.normal(kx, (B, C, H, W), jnp.float32)
    w = (1.0 / np.sqrt(9 * C)) * jax.random.normal(kw, (C, C, 3, 3), jnp.float32)
    b = 0.02 * jax.random.normal(kb, (C,), jnp.float32)

    out = jax.block_until_ready(upsample_forward(x, w, b))
    assert out.shape == (B, C, 2 * H, 2 * W) and out.dtype == jnp.float32

    ref = jax.block_until_ready(ref_upsample(x, w, b))
    # bf16 MXU operands with f32 accumulation -> tolerance loosened accordingly.
    np.testing.assert_allclose(np.asarray(out), np.asarray(ref),
                               rtol=2e-2, atol=2e-2)
    print("KERNEL_OK")
</pallas_src>

<mosaic_0001>
module attributes {stable_mosaic.version = 11 : i64} {
  func.func @_upsample_conv_kernel(%arg0: i32, %arg1: memref<1x256x128xf32, #tpu.memory_space<vmem>>, %arg2: memref<16x128x128xbf16, #tpu.memory_space<vmem>>, %arg3: memref<1x512xf32, #tpu.memory_space<vmem>>, %arg4: memref<1x256x512xf32, #tpu.memory_space<vmem>>) attributes {dimension_semantics = [#tpu.dimension_semantics<parallel>], iteration_bounds = array<i64: 2>, scalar_prefetch = 0 : i64, scratch_operands = 0 : i64, tpu.core_type = #tpu.core_type<tc>, window_params = [{transform_indices = @transform_0, window_bounds = array<i64: 1, 256, 128>}, {pipeline_mode = #tpu.pipeline_mode<synchronous>, transform_indices = @transform_1, window_bounds = array<i64: 16, 128, 128>}, {pipeline_mode = #tpu.pipeline_mode<synchronous>, transform_indices = @transform_2, window_bounds = array<i64: 1, 512>}, {transform_indices = @transform_3, window_bounds = array<i64: 1, 256, 512>}]} {
    %c0 = arith.constant 0 : index
    %c0_0 = arith.constant 0 : index
    %c0_1 = arith.constant 0 : index
    %0 = vector.load %arg1[%c0, %c0_0, %c0_1] : memref<1x256x128xf32, #tpu.memory_space<vmem>>, vector<1x256x128xf32>
    %1 = vector.shape_cast %0 : vector<1x256x128xf32> to vector<256x128xf32>
    %2 = tpu.iota {dimensions = array<i32: 0>} : vector<256x1xi32>
    %c16_i32 = arith.constant 16 : i32
    %c0_i32 = arith.constant 0 : i32
    %3 = arith.cmpi eq, %c16_i32, %c0_i32 : i32
    %c1_i32 = arith.constant 1 : i32
    %4 = arith.select %3, %c1_i32, %c16_i32 : i32
    %5 = vector.broadcast %4 : i32 to vector<256x1xi32>
    %6 = arith.remsi %2, %5 : vector<256x1xi32>
    %c0_i32_2 = arith.constant 0 : i32
    %7 = vector.broadcast %c0_i32_2 : i32 to vector<256x1xi32>
    %8 = arith.cmpi ne, %6, %7 : vector<256x1xi32>
    %c0_i32_3 = arith.constant 0 : i32
    %9 = vector.broadcast %c0_i32_3 : i32 to vector<256x1xi32>
    %10 = arith.cmpi slt, %6, %9 : vector<256x1xi32>
    %c0_i32_4 = arith.constant 0 : i32
    %11 = arith.cmpi slt, %4, %c0_i32_4 : i32
    %12 = vector.broadcast %11 : i1 to vector<256x1xi1>
    %13 = vector.broadcast %12 : vector<256x1xi1> to vector<256x1xi1>
    %14 = arith.xori %10, %13 : vector<256x1xi1>
    %15 = arith.andi %14, %8 : vector<256x1xi1>
    %16 = vector.broadcast %4 : i32 to vector<256x1xi32>
    %17 = arith.addi %6, %16 : vector<256x1xi32>
    %18 = arith.select %15, %17, %6 : vector<256x1xi1>, vector<256x1xi32>
    %c1_i32_5 = arith.constant 1 : i32
    %19 = vector.broadcast %c1_i32_5 : i32 to vector<256x1xi32>
    %20 = arith.cmpi sge, %18, %19 : vector<256x1xi32>
    %c14_i32 = arith.constant 14 : i32
    %21 = vector.broadcast %c14_i32 : i32 to vector<256x1xi32>
    %22 = arith.cmpi sle, %18, %21 : vector<256x1xi32>
    %cst = arith.constant 0.000000e+00 : f32
    %23 = vector.broadcast %cst : f32 to vector<16x128xf32>
    %cst_6 = arith.constant 0.000000e+00 : f32
    %24 = vector.broadcast %cst_6 : f32 to vector<1x128xf32>
    %cst_7 = arith.constant 0.000000e+00 : f32
    %25 = vector.broadcast %cst_7 : f32 to vector<256x128xf32>
    %cst_8 = arith.constant 0.000000e+00 : f32
    %26 = vector.broadcast %cst_8 : f32 to vector<256x128xf32>
    %cst_9 = arith.constant 0.000000e+00 : f32
    %27 = vector.broadcast %cst_9 : f32 to vector<256x128xf32>
    %cst_10 = arith.constant 0.000000e+00 : f32
    %28 = vector.broadcast %cst_10 : f32 to vector<256x128xf32>
    %29 = vector.extract_strided_slice %1 {offsets = [0, 0], sizes = [255, 128], strides = [1, 1]} : vector<256x128xf32> to vector<255x128xf32>
    %30 = tpu.concatenate %24, %29 in 0 : vector<1x128xf32>, vector<255x128xf32> -> vector<256x128xf32>
    %cst_11 = arith.constant 0.000000e+00 : f32
    %31 = vector.shape_cast %20 : vector<256x1xi1> to vector<256x1xi1>
    %32 = vector.broadcast %31 : vector<256x1xi1> to vector<256x128xi1>
    %33 = vector.broadcast %cst_11 : f32 to vector<256x128xf32>
    %34 = arith.select %32, %30, %33 : vector<256x128xi1>, vector<256x128xf32>
    %35 = vector.extract_strided_slice %34 {offsets = [0, 0], sizes = [240, 128], strides = [1, 1]} : vector<256x128xf32> to vector<240x128xf32>
    %36 = tpu.concatenate %23, %35 in 0 : vector<16x128xf32>, vector<240x128xf32> -> vector<256x128xf32>
    %37 = arith.truncf %36 : vector<256x128xf32> to vector<256x128xbf16>
    %c0_12 = arith.constant 0 : index
    %c0_13 = arith.constant 0 : index
    %c0_14 = arith.constant 0 : index
    %38 = vector.load %arg2[%c0_12, %c0_13, %c0_14] : memref<16x128x128xbf16, #tpu.memory_space<vmem>>, vector<1x128x128xbf16>
    %39 = vector.shape_cast %38 : vector<1x128x128xbf16> to vector<128x128xbf16>
    %cst_15 = arith.constant dense<0.000000e+00> : vector<256x128xf32>
    %40 = tpu.matmul %37, %39, %cst_15 {dimension_numbers = #tpu.dot_dimension_numbers<[1], [0], [0], [1], [0, 0, 1, 1], [], []>} : vector<256x128xbf16>, vector<128x128xbf16>, vector<256x128xf32> -> vector<256x128xf32>
    %41 = arith.addf %25, %40 : vector<256x128xf32>
    %42 = arith.truncf %34 : vector<256x128xf32> to vector<256x128xbf16>
    %c1 = arith.constant 1 : index
    %c0_16 = arith.constant 0 : index
    %c0_17 = arith.constant 0 : index
    %43 = vector.load %arg2[%c1, %c0_16, %c0_17] : memref<16x128x128xbf16, #tpu.memory_space<vmem>>, vector<1x128x128xbf16>
    %44 = vector.shape_cast %43 : vector<1x128x128xbf16> to vector<128x128xbf16>
    %cst_18 = arith.constant dense<0.000000e+00> : vector<256x128xf32>
    %45 = tpu.matmul %42, %44, %cst_18 {dimension_numbers = #tpu.dot_dimension_numbers<[1], [0], [0], [1], [0, 0, 1, 1], [], []>} : vector<256x128xbf16>, vector<128x128xbf16>, vector<256x128xf32> -> vector<256x128xf32>
    %46 = arith.addf %41, %45 : vector<256x128xf32>
    %c2 = arith.constant 2 : index
    %c0_19 = arith.constant 0 : index
    %c0_20 = arith.constant 0 : index
    %47 = vector.load %arg2[%c2, %c0_19, %c0_20] : memref<16x128x128xbf16, #tpu.memory_space<vmem>>, vector<1x128x128xbf16>
    %48 = vector.shape_cast %47 : vector<1x128x128xbf16> to vector<128x128xbf16>
    %cst_21 = arith.constant dense<0.000000e+00> : vector<256x128xf32>
    %49 = tpu.matmul %42, %48, %cst_21 {dimension_numbers = #tpu.dot_dimension_numbers<[1], [0], [0], [1], [0, 0, 1, 1], [], []>} : vector<256x128xbf16>, vector<128x128xbf16>, vector<256x128xf32> -> vector<256x128xf32>
    %50 = arith.addf %27, %49 : vector<256x128xf32>
    %51 = vector.extract_strided_slice %34 {offsets = [16, 0], sizes = [240, 128], strides = [1, 1]} : vector<256x128xf32> to vector<240x128xf32>
    %52 = tpu.concatenate %51, %23 in 0 : vector<240x128xf32>, vector<16x128xf32> -> vector<256x128xf32>
    %53 = arith.truncf %52 : vector<256x128xf32> to vector<256x128xbf16>
    %c3 = arith.constant 3 : index
    %c0_22 = arith.constant 0 : index
    %c0_23 = arith.constant 0 : index
    %54 = vector.load %arg2[%c3, %c0_22, %c0_23] : memref<16x128x128xbf16, #tpu.memory_space<vmem>>, vector<1x128x128xbf16>
    %55 = vector.shape_cast %54 : vector<1x128x128xbf16> to vector<128x128xbf16>
    %cst_24 = arith.constant dense<0.000000e+00> : vector<256x128xf32>
    %56 = tpu.matmul %53, %55, %cst_24 {dimension_numbers = #tpu.dot_dimension_numbers<[1], [0], [0], [1], [0, 0, 1, 1], [], []>} : vector<256x128xbf16>, vector<128x128xbf16>, vector<256x128xf32> -> vector<256x128xf32>
    %57 = arith.addf %50, %56 : vector<256x128xf32>
    %58 = vector.extract_strided_slice %1 {offsets = [0, 0], sizes = [240, 128], strides = [1, 1]} : vector<256x128xf32> to vector<240x128xf32>
    %59 = tpu.concatenate %23, %58 in 0 : vector<16x128xf32>, vector<240x128xf32> -> vector<256x128xf32>
    %60 = arith.truncf %59 : vector<256x128xf32> to vector<256x128xbf16>
    %c4 = arith.constant 4 : index
    %c0_25 = arith.constant 0 : index
    %c0_26 = arith.constant 0 : index
    %61 = vector.load %arg2[%c4, %c0_25, %c0_26] : memref<16x128x128xbf16, #tpu.memory_space<vmem>>, vector<1x128x128xbf16>
    %62 = vector.shape_cast %61 : vector<1x128x128xbf16> to vector<128x128xbf16>
    %cst_27 = arith.constant dense<0.000000e+00> : vector<256x128xf32>
    %63 = tpu.matmul %60, %62, %cst_27 {dimension_numbers = #tpu.dot_dimension_numbers<[1], [0], [0], [1], [0, 0, 1, 1], [], []>} : vector<256x128xbf16>, vector<128x128xbf16>, vector<256x128xf32> -> vector<256x128xf32>
    %64 = arith.addf %46, %63 : vector<256x128xf32>
    %c5 = arith.constant 5 : index
    %c0_28 = arith.constant 0 : index
    %c0_29 = arith.constant 0 : index
    %65 = vector.load %arg2[%c5, %c0_28, %c0_29] : memref<16x128x128xbf16, #tpu.memory_space<vmem>>, vector<1x128x128xbf16>
    %66 = vector.shape_cast %65 : vector<1x128x128xbf16> to vector<128x128xbf16>
    %cst_30 = arith.constant dense<0.000000e+00> : vector<256x128xf32>
    %67 = tpu.matmul %60, %66, %cst_30 {dimension_numbers = #tpu.dot_dimension_numbers<[1], [0], [0], [1], [0, 0, 1, 1], [], []>} : vector<256x128xbf16>, vector<128x128xbf16>, vector<256x128xf32> -> vector<256x128xf32>
    %68 = arith.addf %26, %67 : vector<256x128xf32>
    %69 = arith.truncf %1 : vector<256x128xf32> to vector<256x128xbf16>
    %c6 = arith.constant 6 : index
    %c0_31 = arith.constant 0 : index
    %c0_32 = arith.constant 0 : index
    %70 = vector.load %arg2[%c6, %c0_31, %c0_32] : memref<16x128x128xbf16, #tpu.memory_space<vmem>>, vector<1x128x128xbf16>
    %71 = vector.shape_cast %70 : vector<1x128x128xbf16> to vector<128x128xbf16>
    %cst_33 = arith.constant dense<0.000000e+00> : vector<256x128xf32>
    %72 = tpu.matmul %69, %71, %cst_33 {dimension_numbers = #tpu.dot_dimension_numbers<[1], [0], [0], [1], [0, 0, 1, 1], [], []>} : vector<256x128xbf16>, vector<128x128xbf16>, vector<256x128xf32> -> vector<256x128xf32>
    %73 = arith.addf %64, %72 : vector<256x128xf32>
    %c7 = arith.constant 7 : index
    %c0_34 = arith.constant 0 : index
    %c0_35 = arith.constant 0 : index
    %74 = vector.load %arg2[%c7, %c0_34, %c0_35] : memref<16x128x128xbf16, #tpu.memory_space<vmem>>, vector<1x128x128xbf16>
    %75 = vector.shape_cast %74 : vector<1x128x128xbf16> to vector<128x128xbf16>
    %cst_36 = arith.constant dense<0.000000e+00> : vector<256x128xf32>
    %76 = tpu.matmul %69, %75, %cst_36 {dimension_numbers = #tpu.dot_dimension_numbers<[1], [0], [0], [1], [0, 0, 1, 1], [], []>} : vector<256x128xbf16>, vector<128x128xbf16>, vector<256x128xf32> -> vector<256x128xf32>
    %77 = arith.addf %68, %76 : vector<256x128xf32>
    %c8 = arith.constant 8 : index
    %c0_37 = arith.constant 0 : index
    %c0_38 = arith.constant 0 : index
    %78 = vector.load %arg2[%c8, %c0_37, %c0_38] : memref<16x128x128xbf16, #tpu.memory_space<vmem>>, vector<1x128x128xbf16>
    %79 = vector.shape_cast %78 : vector<1x128x128xbf16> to vector<128x128xbf16>
    %cst_39 = arith.constant dense<0.000000e+00> : vector<256x128xf32>
    %80 = tpu.matmul %69, %79, %cst_39 {dimension_numbers = #tpu.dot_dimension_numbers<[1], [0], [0], [1], [0, 0, 1, 1], [], []>} : vector<256x128xbf16>, vector<128x128xbf16>, vector<256x128xf32> -> vector<256x128xf32>
    %81 = arith.addf %57, %80 : vector<256x128xf32>
    %c9 = arith.constant 9 : index
    %c0_40 = arith.constant 0 : index
    %c0_41 = arith.constant 0 : index
    %82 = vector.load %arg2[%c9, %c0_40, %c0_41] : memref<16x128x128xbf16, #tpu.memory_space<vmem>>, vector<1x128x128xbf16>
    %83 = vector.shape_cast %82 : vector<1x128x128xbf16> to vector<128x128xbf16>
    %cst_42 = arith.constant dense<0.000000e+00> : vector<256x128xf32>
    %84 = tpu.matmul %69, %83, %cst_42 {dimension_numbers = #tpu.dot_dimension_numbers<[1], [0], [0], [1], [0, 0, 1, 1], [], []>} : vector<256x128xbf16>, vector<128x128xbf16>, vector<256x128xf32> -> vector<256x128xf32>
    %85 = arith.addf %28, %84 : vector<256x128xf32>
    %86 = vector.extract_strided_slice %1 {offsets = [16, 0], sizes = [240, 128], strides = [1, 1]} : vector<256x128xf32> to vector<240x128xf32>
    %87 = tpu.concatenate %86, %23 in 0 : vector<240x128xf32>, vector<16x128xf32> -> vector<256x128xf32>
    %88 = arith.truncf %87 : vector<256x128xf32> to vector<256x128xbf16>
    %c10 = arith.constant 10 : index
    %c0_43 = arith.constant 0 : index
    %c0_44 = arith.constant 0 : index
    %89 = vector.load %arg2[%c10, %c0_43, %c0_44] : memref<16x128x128xbf16, #tpu.memory_space<vmem>>, vector<1x128x128xbf16>
    %90 = vector.shape_cast %89 : vector<1x128x128xbf16> to vector<128x128xbf16>
    %cst_45 = arith.constant dense<0.000000e+00> : vector<256x128xf32>
    %91 = tpu.matmul %88, %90, %cst_45 {dimension_numbers = #tpu.dot_dimension_numbers<[1], [0], [0], [1], [0, 0, 1, 1], [], []>} : vector<256x128xbf16>, vector<128x128xbf16>, vector<256x128xf32> -> vector<256x128xf32>
    %92 = arith.addf %81, %91 : vector<256x128xf32>
    %c11 = arith.constant 11 : index
    %c0_46 = arith.constant 0 : index
    %c0_47 = arith.constant 0 : index
    %93 = vector.load %arg2[%c11, %c0_46, %c0_47] : memref<16x128x128xbf16, #tpu.memory_space<vmem>>, vector<1x128x128xbf16>
    %94 = vector.shape_cast %93 : vector<1x128x128xbf16> to vector<128x128xbf16>
    %cst_48 = arith.constant dense<0.000000e+00> : vector<256x128xf32>
    %95 = tpu.matmul %88, %94, %cst_48 {dimension_numbers = #tpu.dot_dimension_numbers<[1], [0], [0], [1], [0, 0, 1, 1], [], []>} : vector<256x128xbf16>, vector<128x128xbf16>, vector<256x128xf32> -> vector<256x128xf32>
    %96 = arith.addf %85, %95 : vector<256x128xf32>
    %97 = vector.extract_strided_slice %1 {offsets = [1, 0], sizes = [255, 128], strides = [1, 1]} : vector<256x128xf32> to vector<255x128xf32>
    %98 = tpu.concatenate %97, %24 in 0 : vector<255x128xf32>, vector<1x128xf32> -> vector<256x128xf32>
    %cst_49 = arith.constant 0.000000e+00 : f32
    %99 = vector.shape_cast %22 : vector<256x1xi1> to vector<256x1xi1>
    %100 = vector.broadcast %99 : vector<256x1xi1> to vector<256x128xi1>
    %101 = vector.broadcast %cst_49 : f32 to vector<256x128xf32>
    %102 = arith.select %100, %98, %101 : vector<256x128xi1>, vector<256x128xf32>
    %103 = vector.extract_strided_slice %102 {offsets = [0, 0], sizes = [240, 128], strides = [1, 1]} : vector<256x128xf32> to vector<240x128xf32>
    %104 = tpu.concatenate %23, %103 in 0 : vector<16x128xf32>, vector<240x128xf32> -> vector<256x128xf32>
    %105 = arith.truncf %104 : vector<256x128xf32> to vector<256x128xbf16>
    %c12 = arith.constant 12 : index
    %c0_50 = arith.constant 0 : index
    %c0_51 = arith.constant 0 : index
    %106 = vector.load %arg2[%c12, %c0_50, %c0_51] : memref<16x128x128xbf16, #tpu.memory_space<vmem>>, vector<1x128x128xbf16>
    %107 = vector.shape_cast %106 : vector<1x128x128xbf16> to vector<128x128xbf16>
    %cst_52 = arith.constant dense<0.000000e+00> : vector<256x128xf32>
    %108 = tpu.matmul %105, %107, %cst_52 {dimension_numbers = #tpu.dot_dimension_numbers<[1], [0], [0], [1], [0, 0, 1, 1], [], []>} : vector<256x128xbf16>, vector<128x128xbf16>, vector<256x128xf32> -> vector<256x128xf32>
    %109 = arith.addf %77, %108 : vector<256x128xf32>
    %110 = arith.truncf %102 : vector<256x128xf32> to vector<256x128xbf16>
    %c13 = arith.constant 13 : index
    %c0_53 = arith.constant 0 : index
    %c0_54 = arith.constant 0 : index
    %111 = vector.load %arg2[%c13, %c0_53, %c0_54] : memref<16x128x128xbf16, #tpu.memory_space<vmem>>, vector<1x128x128xbf16>
    %112 = vector.shape_cast %111 : vector<1x128x128xbf16> to vector<128x128xbf16>
    %cst_55 = arith.constant dense<0.000000e+00> : vector<256x128xf32>
    %113 = tpu.matmul %110, %112, %cst_55 {dimension_numbers = #tpu.dot_dimension_numbers<[1], [0], [0], [1], [0, 0, 1, 1], [], []>} : vector<256x128xbf16>, vector<128x128xbf16>, vector<256x128xf32> -> vector<256x128xf32>
    %114 = arith.addf %109, %113 : vector<256x128xf32>
    %c14 = arith.constant 14 : index
    %c0_56 = arith.constant 0 : index
    %c0_57 = arith.constant 0 : index
    %115 = vector.load %arg2[%c14, %c0_56, %c0_57] : memref<16x128x128xbf16, #tpu.memory_space<vmem>>, vector<1x128x128xbf16>
    %116 = vector.shape_cast %115 : vector<1x128x128xbf16> to vector<128x128xbf16>
    %cst_58 = arith.constant dense<0.000000e+00> : vector<256x128xf32>
    %117 = tpu.matmul %110, %116, %cst_58 {dimension_numbers = #tpu.dot_dimension_numbers<[1], [0], [0], [1], [0, 0, 1, 1], [], []>} : vector<256x128xbf16>, vector<128x128xbf16>, vector<256x128xf32> -> vector<256x128xf32>
    %118 = arith.addf %96, %117 : vector<256x128xf32>
    %119 = vector.extract_strided_slice %102 {offsets = [16, 0], sizes = [240, 128], strides = [1, 1]} : vector<256x128xf32> to vector<240x128xf32>
    %120 = tpu.concatenate %119, %23 in 0 : vector<240x128xf32>, vector<16x128xf32> -> vector<256x128xf32>
    %121 = arith.truncf %120 : vector<256x128xf32> to vector<256x128xbf16>
    %c15 = arith.constant 15 : index
    %c0_59 = arith.constant 0 : index
    %c0_60 = arith.constant 0 : index
    %122 = vector.load %arg2[%c15, %c0_59, %c0_60] : memref<16x128x128xbf16, #tpu.memory_space<vmem>>, vector<1x128x128xbf16>
    %123 = vector.shape_cast %122 : vector<1x128x128xbf16> to vector<128x128xbf16>
    %cst_61 = arith.constant dense<0.000000e+00> : vector<256x128xf32>
    %124 = tpu.matmul %121, %123, %cst_61 {dimension_numbers = #tpu.dot_dimension_numbers<[1], [0], [0], [1], [0, 0, 1, 1], [], []>} : vector<256x128xbf16>, vector<128x128xbf16>, vector<256x128xf32> -> vector<256x128xf32>
    %125 = arith.addf %118, %124 : vector<256x128xf32>
    %126 = tpu.concatenate %73, %114, %92, %125 in 1 : vector<256x128xf32>, vector<256x128xf32>, vector<256x128xf32>, vector<256x128xf32> -> vector<256x512xf32>
    %c0_62 = arith.constant 0 : index
    %c0_63 = arith.constant 0 : index
    %127 = vector.load %arg3[%c0_62, %c0_63] : memref<1x512xf32, #tpu.memory_space<vmem>>, vector<1x512xf32>
    %128 = vector.broadcast %127 : vector<1x512xf32> to vector<256x512xf32>
    %129 = arith.addf %126, %128 : vector<256x512xf32>
    %c0_64 = arith.constant 0 : index
    %c0_65 = arith.constant 0 : index
    %c0_66 = arith.constant 0 : index
    %130 = vector.load %arg4[%c0_64, %c0_65, %c0_66] : memref<1x256x512xf32, #tpu.memory_space<vmem>>, vector<1x256x512xf32>
    %131 = vector.shape_cast %130 : vector<1x256x512xf32> to vector<256x512xf32>
    %132 = vector.shape_cast %129 : vector<256x512xf32> to vector<1x256x512xf32>
    tpu.vector_store %arg4[%c0_64, %c0_65, %c0_66], %132 {strides = array<i32>} : memref<1x256x512xf32, #tpu.memory_space<vmem>>, vector<1x256x512xf32>,
    return
  }
  func.func @transform_0(%arg0: i32) -> (i32, i32, i32) {
    %c0_i32 = arith.constant 0 : i32
    %c0_i32_0 = arith.constant 0 : i32
    %c0_i32_1 = arith.constant 0 : i32
    return %arg0, %c0_i32, %c0_i32_0 : i32, i32, i32
  }
  func.func @transform_1(%arg0: i32) -> (i32, i32, i32) {
    %c0_i32 = arith.constant 0 : i32
    %c0_i32_0 = arith.constant 0 : i32
    %c0_i32_1 = arith.constant 0 : i32
    %c0_i32_2 = arith.constant 0 : i32
    return %c0_i32, %c0_i32_0, %c0_i32_1 : i32, i32, i32
  }
  func.func @transform_2(%arg0: i32) -> (i32, i32) {
    %c0_i32 = arith.constant 0 : i32
    %c0_i32_0 = arith.constant 0 : i32
    %c0_i32_1 = arith.constant 0 : i32
    return %c0_i32, %c0_i32_0 : i32, i32
  }
  func.func @transform_3(%arg0: i32) -> (i32, i32, i32) {
    %c0_i32 = arith.constant 0 : i32
    %c0_i32_0 = arith.constant 0 : i32
    %c0_i32_1 = arith.constant 0 : i32
    return %arg0, %c0_i32, %c0_i32_0 : i32, i32, i32
  }
}

</mosaic_0001>

<bundles_post_ra>
// kernel: upsample_forward.1
= control target key start
LH: loop header
LB: loop body
LE: loop exit
PB: predicated region body
PF: predicated region fallthrough
CT: control target
= control target key end

     0   :  { %s7845_s12 = smov 0   ;;  %s9682_s0 = inlined_call_operand.vmem [shape: f32[2,256,128], index: 0, kind: input, shape index: {}]   ;;  %s9683_s1 = inlined_call_operand.vmem [shape: bf16[16,128,128], index: 1, kind: input, shape index: {}]   ;;  %s9684_s2 = inlined_call_operand.vmem [shape: f32[1,512], index: 2, kind: input, shape index: {}]   ;;  %s9685_s3 = inlined_call_operand.vmem [shape: f32[2,256,512], index: 3, kind: output, shape index: {}]  }
   0x1 LB: > { %s5356_s13 = sadd.s32 4294967295, %s7821_s12   ;;  %p5360_p0 = scmp.ge.s32.totalorder %s7821_s12, 1  ;;  %s7821_s12 = sphi %s7845_s12, %s13_s12  }
   0x2   : > { %p137_p1 = scmp.lt.s32.totalorder %s7821_s12, 3 }
   0x4   : > { %p138_p2 = pnand %p5360_p0, %p137_p1 }
   0x5   : > { %v7655_v0 = vld [vmem:[%s9683_s1 + $0x40] sm:$0xff] (!%p138_p2)   ;;  %v204_v2 = vlaneseq (!%p138_p2)  ;;  %v7657_v3 = vld [vmem:[%s9683_s1 + $0x48] sm:$0xff] (!%p138_p2)   ;;  %p161_p3 = scmp.lt.s32.totalorder (!%p138_p2), %s5356_s13, 1  ;;  %v7659_v5 = vld [vmem:[%s9683_s1 + $0x50] sm:$0xff] (!%p138_p2)   ;;  %vm9688_vm1 = vcmask (!%p138_p2), 1040384   ;;  %vm9691_vm3 = vmmov (!%p138_p2), 1  }
   0x6   : > { %141 = sbr.rel (%p138_p2) target bundleno = 761 (0x2f9), region = 32  ;;  %v7656_v1 = vld [vmem:[%s9683_s1 + $0xc0] sm:$0xff] (!%p138_p2)   ;;  %6493 = vmatprep.subr.bf16.mxu0 (!%p138_p2), %v7655_v0  ;;  %v7658_v4 = vld [vmem:[%s9683_s1 + $0xc8] sm:$0xff] (!%p138_p2)   ;;  %v7660_v6 = vld [vmem:[%s9683_s1 + $0xd0] sm:$0xff] (!%p138_p2)  }
   0x7   : > { %6589 = vmatprep.subr.bf16.mxu1 (!%p138_p2), %v7656_v1  ;;  %6494 = vmatpush3.bf16.msra.mxu0 (!%p138_p2), %v7655_v0  ;;  %v7871_v7 = vshrl.u32 (!%p138_p2), %v204_v2, 7  ;;  %v7661_v8 = vld [vmem:[%s9683_s1 + $0x58] sm:$0xff] (!%p138_p2)   ;;  %v7663_v11 = vld [vmem:[%s9683_s1 + $0x60] sm:$0xff] (!%p138_p2)   ;;  %v7665_v15 = vld [vmem:[%s9683_s1 + $0x68] sm:$0xff] (!%p138_p2)  }
   0x8   : > { %6590 = vmatpush3.bf16.msra.mxu1 (!%p138_p2), %v7656_v1  ;;  %6495 = vmatprep.subr.bf16.mxu0 (!%p138_p2), %v7657_v3  ;;  %v7662_v9 = vld [vmem:[%s9683_s1 + $0xd8] sm:$0xff] (!%p138_p2)   ;;  %v7664_v13 = vld [vmem:[%s9683_s1 + $0xe0] sm:$0xff] (!%p138_p2)   ;;  %v7666_v19 = vld [vmem:[%s9683_s1 + $0xe8] sm:$0xff] (!%p138_p2)  }
   0x9   : > { %6591 = vmatprep.subr.bf16.mxu1 (!%p138_p2), %v7658_v4  ;;  %v207_v10 = vadd.s32 (!%p138_p2), 16, %v7871_v7  ;;  %v241_v12 = vand.u32 (!%p138_p2), 15, %v7871_v7  ;;  %v7667_v25 = vld [vmem:[%s9683_s1 + $0x70] sm:$0xff] (!%p138_p2)   ;;  %v209_v39 = vadd.s32 (!%p138_p2), 32, %v7871_v7  ;;  %v7669_v40 = vld [vmem:[%s9683_s1 + $0x78] sm:$0xff] (!%p138_p2)   ;;  %v211_v43 = vadd.s32 (!%p138_p2), 48, %v7871_v7 }
   0xa   : > { %v7668_v28 = vld [vmem:[%s9683_s1 + $0xf0] sm:$0xff] (!%p138_p2)   ;;  %v7670_v46 = vld [vmem:[%s9683_s1 + $0xf8] sm:$0xff] (!%p138_p2)   ;;  %v7671_v50 = vld [vmem:[%s9683_s1] sm:$0xff] (!%p138_p2)   ;;  %v213_v57 = vadd.s32 (!%p138_p2), 64, %v7871_v7  ;;  %v215_v62 = vadd.s32 (!%p138_p2), 80, %v7871_v7 }
   0xb   : > { %6496 = vmatpush3.bf16.msra.mxu0 (!%p138_p2), %v7657_v3  ;;  %v255_v14 = vand.u32 (!%p138_p2), 15, %v207_v10  ;;  %vm7900_vm0 = vcmp.ge.s32.totalorder (!%p138_p2), %v241_v12, 1  ;;  %v269_v47 = vand.u32 (!%p138_p2), 15, %v209_v39  ;;  %v283_v51 = vand.u32 (!%p138_p2), 15, %v211_v43  ;;  %v7672_v54 = vld [vmem:[%s9683_s1 + $0x80] sm:$0xff] (!%p138_p2)   ;;  %v7674_v10 = vld [vmem:[%s9683_s1 + $0x88] sm:$0xff] (!%p138_p2)  }
   0xc   : > { %6592 = vmatpush3.bf16.msra.mxu1 (!%p138_p2), %v7658_v4  ;;  %6497 = vmatprep.subr.bf16.mxu0 (!%p138_p2), %v7659_v5  ;;  %vm7924_vm4 = vmpackc.low (!%p138_p2), %vm9691_vm3, %vm7900_vm0  ;;  %v7673_v4 = vld [vmem:[%s9683_s1 + $0x8] sm:$0xff] (!%p138_p2)   ;;  %v7675_v12 = vld [vmem:[%s9683_s1 + $0x10] sm:$0xff] (!%p138_p2)  }
   0xd   : > { %s9823_s13 = smov (!%p161_p3, %s5356_s13), 1  ;;  %6593 = vmatprep.subr.bf16.mxu1 %v7660_v6  ;;  %vm7909_vm2 = vcmp.ge.s32.totalorder %v255_v14, 1  ;;  %vm625_vm6 = vcmp.ge.s32.totalorder %v269_v47, 1  ;;  %vm627_vm7 = vcmp.ge.s32.totalorder %v283_v51, 1  ;;  %v7678_v39 = vld [vmem:[%s9683_s1 + $0x98] sm:$0xff]   ;;  %v221_v47 = vadd.s32 128, %v7871_v7 }
   0xe   : > { %s6107_s30 = sshll.u32 %s9823_s13, 8  ;;  %vm7935_vm5 = vmpackc.low %vm9691_vm3, %vm7909_vm2  ;;  %v7679_v51 = vld [vmem:[%s9683_s1 + $0x20] sm:$0xff]   ;;  %v7693_v31 = vld [vmem:[%s9683_s1 + $0x118] sm:$0xff]   ;;  %s6108_s25 = sshll.u32 %s9823_s13, 10 }
   0xf   : > { %6498 = vmatpush3.bf16.msra.mxu0 %v7659_v5  ;;  %s7893_s10 = scalar_lea.vmem %s9682_s0, %s6107_s30  ;;  %vm7980_vm8 = vmpackc.low %vm9691_vm3, %vm625_vm6  ;;  %v297_v5 = vand.u32 15, %v213_v57  ;;  %v9732_v57 = vmov 0  ;;  %v7695_v35 = vld [vmem:[%s9683_s1 + $0x120] sm:$0xff]   ;;  %v7698_v0 = vld [vmem:[%s9683_s1 + $0x1e8] sm:$0xff]   ;;  %s9125_s29 = scalar_lea.vmem %s9685_s3, %s6108_s25 }
  0x10   : > { %6594 = vmatpush3.bf16.msra.mxu1 %v7660_v6  ;;  %6499 = vmatprep.subr.bf16.mxu0 %v7661_v8  ;;  %v172_v16 = vld [vmem:[%s7893_s10] sm:$0xff]  ;;  %v173_v17 = vld [vmem:[%s7893_s10 + $0x8] sm:$0xff]  ;;  %v174_v22 = vld [vmem:[%s7893_s10 + $0x10] sm:$0xff] }
  0x11   : > { %6595 = vmatprep.subr.bf16.mxu1 %v7662_v9  ;;  %v718_v20 = vrot.slane %v172_v16, 7  ;;  %v719_v21 = vrot.slane %v173_v17, 7  ;;  %v175_v23 = vld [vmem:[%s7893_s10 + $0x18] sm:$0xff]  ;;  %v721_v26 = vrot.slane %v174_v22, 7  ;;  %v176_v37 = vld [vmem:[%s7893_s10 + $0x20] sm:$0xff]  ;;  %v177_v38 = vld [vmem:[%s7893_s10 + $0x28] sm:$0xff] }
  0x12   : > { %v723_v27 = vrot.slane %v175_v23, 7  ;;  %v178_v41 = vld [vmem:[%s7893_s10 + $0x30] sm:$0xff]  ;;  %v179_v42 = vld [vmem:[%s7893_s10 + $0x38] sm:$0xff]  ;;  %v725_v44 = vrot.slane %v176_v37, 7  ;;  %v727_v45 = vrot.slane %v177_v38, 7  ;;  %v180_v55 = vld [vmem:[%s7893_s10 + $0x40] sm:$0xff] }
  0x13   : > { %6500 = vmatpush3.bf16.msra.mxu0 %v7661_v8  ;;  %v720_v29 = vsel %vm9688_vm1, %v718_v20, %v719_v21  ;;  %v813_v30 = vsel %vm9688_vm1, 0.0, %v718_v20  ;;  %v722_v33 = vsel %vm9688_vm1, %v719_v21, %v721_v26  ;;  %v729_v48 = vrot.slane %v178_v41, 7  ;;  %v181_v56 = vld [vmem:[%s7893_s10 + $0x48] sm:$0xff]  ;;  %v182_v60 = vld [vmem:[%s7893_s10 + $0x50] sm:$0xff]  ;;  %v7974_v61 = vld [vmem:[%s7893_s10 + $0x58] sm:$0xff] }
  0x14   : > { %6596 = vmatpush3.bf16.msra.mxu1 %v7662_v9  ;;  %6501 = vmatprep.subr.bf16.mxu0 %v7663_v11  ;;  %v7928_v32 = vpack.c.bf16 %v720_v29, %v813_v30  ;;  %v724_v34 = vsel %vm9688_vm1, %v721_v26, %v723_v27  ;;  %v731_v49 = vrot.slane %v179_v42, 7  ;;  %v726_v52 = vsel %vm9688_vm1, %v723_v27, %v725_v44  ;;  %vm7994_vm9 = vmpackc.low %vm9691_vm3, %vm627_vm7  ;;  %v8014_v16 = vld [vmem:[%s7893_s10 + $0x60] sm:$0xff]  ;;  %v8017_v17 = vld [vmem:[%s7893_s10 + $0x68] sm:$0xff] }
  0x15   : > { %6597 = vmatprep.subr.bf16.mxu1 %v7664_v13  ;;  %v7939_v36 = vpack.c.bf16 %v724_v34, %v722_v33  ;;  %v728_v53 = vsel %vm9688_vm1, %v725_v44, %v727_v45  ;;  %v730_v58 = vsel %vm9688_vm1, %v727_v45, %v729_v48  ;;  %v733_v1 = vrot.slane %v180_v55, 7  ;;  %v7676_v20 = vld [vmem:[%s9683_s1 + $0x90] sm:$0xff]   ;;  %v8029_v22 = vld [vmem:[%s7893_s10 + $0x78] sm:$0xff]  ;;  %v8071_v43 = vld [vmem:[%s7893_s10 + $0x80] sm:$0xff] }
  0x16   : > { %6509 = vmatprep.mubr.msk.bf16.mxu0 %vm7924_vm4, %v7928_v32  ;;  %v732_v59 = vsel %vm9688_vm1, %v729_v48, %v731_v49  ;;  %v7977_v63 = vpack.c.bf16 %v728_v53, %v726_v52  ;;  %v735_v2 = vrot.slane %v181_v56, 7  ;;  %v737_v6 = vrot.slane %v182_v60, 7  ;;  %v186_v21 = vld [vmem:[%s7893_s10 + $0x70] sm:$0xff]  ;;  %v7677_v38 = vld [vmem:[%s9683_s1 + $0x18] sm:$0xff]   ;;  %v8074_v44 = vld [vmem:[%s7893_s10 + $0x88] sm:$0xff] }
  0x17   : > { %6502 = vmatpush3.bf16.msra.mxu0 %v7663_v11  ;;  %6605 = vmatprep.mubr.msk.bf16.mxu1 %vm7935_vm5, %v7939_v36  ;;  %v7984_v3 = vpack.c.bf16 %v732_v59, %v730_v58  ;;  %v739_v8 = vrot.slane %v7974_v61, 7  ;;  %v311_v11 = vand.u32 15, %v215_v62  ;;  %v734_v14 = vsel %vm9688_vm1, %v731_v49, %v733_v1  ;;  %v8084_v49 = vld [vmem:[%s7893_s10 + $0x90] sm:$0xff]  ;;  %v7680_v52 = vld [vmem:[%s9683_s1 + $0xa0] sm:$0xff]  }
  0x18   : > { %6598 = vmatpush3.bf16.msra.mxu1 %v7664_v13  ;;  %6503 = vmatprep.subr.bf16.mxu0 %v7665_v15  ;;  %v217_v13 = vadd.s32 96, %v7871_v7  ;;  %vm629_vm10 = vcmp.ge.s32.totalorder %v297_v5, 1  ;;  %v738_v18 = vsel %vm9688_vm1, %v735_v2, %v737_v6  ;;  %v219_v23 = vadd.s32 112, %v7871_v7  ;;  %v7682_v5 = vld [vmem:[%s9683_s1 + $0xa8] sm:$0xff]   ;;  %v7700_v9 = vld [vmem:[%s9683_s1 + $0x1f0] sm:$0xff]  }
  0x19   : > { %6599 = vmatprep.subr.bf16.mxu1 %v7666_v19  ;;  %vm631_vm11 = vcmp.ge.s32.totalorder %v311_v11, 1  ;;  %v741_v26 = vrot.slane %v8014_v16, 7  ;;  %v743_v27 = vrot.slane %v8017_v17, 7  ;;  %vm8037_vm12 = vmpackc.low %vm9691_vm3, %vm629_vm10  ;;  %v745_v30 = vrot.slane %v186_v21, 7 }
  0x1a   : > { %v747_v33 = vrot.slane %v8029_v22, 7  ;;  %vm8045_vm13 = vmpackc.low %vm9691_vm3, %vm631_vm11  ;;  %v9726_v34 = vmov 0  ;;  %v339_v37 = vand.u32 15, %v219_v23  ;;  %v223_v48 = vadd.s32 144, %v7871_v7  ;;  %v7684_v22 = vld [vmem:[%s9683_s1 + $0xb0] sm:$0xff]  }
  0x1b   : > { %6504 = vmatpush3.bf16.msra.mxu0 %v7665_v15  ;;  %v736_v15 = vsel %vm9688_vm1, %v733_v1, %v735_v2  ;;  %v9727_v34 = vsel %vm8045_vm13, 4294967295, %v9726_v34  ;;  %v742_v41 = vsel %vm9688_vm1, %v739_v8, %v741_v26  ;;  %v744_v42 = vsel %vm9688_vm1, %v741_v26, %v743_v27  ;;  %v7681_v1 = vld [vmem:[%s9683_s1 + $0x28] sm:$0xff]   ;;  %v8122_v2 = vld [vmem:[%s7893_s10 + $0xa0] sm:$0xff] }
  0x1c   : > { %6600 = vmatpush3.bf16.msra.mxu1 %v7666_v19  ;;  %6505 = vmatprep.subr.bf16.mxu0 %v7667_v25  ;;  %v740_v19 = vsel %vm9688_vm1, %v737_v6, %v739_v8  ;;  %v8032_v24 = vpack.c.bf16 %v736_v15, %v734_v14  ;;  %v746_v45 = vsel %vm9688_vm1, %v743_v27, %v745_v30  ;;  %vm635_vm15 = vcmp.ge.s32.totalorder %v339_v37, 1  ;;  %v8135_v6 = vld [vmem:[%s7893_s10 + $0xa8] sm:$0xff]  ;;  %v8154_v14 = vld [vmem:[%s7893_s10 + $0xb8] sm:$0xff] }
  0x1d   : > { %6601 = vmatprep.subr.bf16.mxu1 %v7668_v28  ;;  %v8041_v29 = vpack.c.bf16 %v740_v19, %v738_v18  ;;  %v9730_v53 = vmov 0  ;;  %v749_v56 = vrot.slane %v8071_v43, 7  ;;  %vm8108_vm2 = vmpackc.low %vm9691_vm3, %vm635_vm15  ;;  %v353_v58 = vand.u32 15, %v221_v47  ;;  %v8213_v47 = vld [vmem:[%s7893_s10 + $0xd0] sm:$0xff] }
  0x1e   : > { %v9733_v57 = vsel %vm8108_vm2, 4294967295, %v9732_v57  ;;  %v751_v59 = vrot.slane %v8074_v44, 7  ;;  %v367_v60 = vand.u32 15, %v223_v48  ;;  %v753_v61 = vrot.slane %v8084_v49, 7 }
  0x1f   : > { %6506 = vmatpush3.bf16.msra.mxu0 %v7667_v25  ;;  %v325_v25 = vand.u32 15, %v217_v13  ;;  %vm8140_vm6 = vcmp.ge.s32.totalorder %v353_v58, 1  ;;  %v8151_v13 = vld [vmem:[%s7893_s10 + $0xb0] sm:$0xff]  ;;  %v227_v19 = vadd.s32 176, %v7871_v7  ;;  %v9738_v23 = vmov 0 }
  0x20   : > { %6602 = vmatpush3.bf16.msra.mxu1 %v7668_v28  ;;  %6507 = vmatprep.subr.bf16.mxu0 %v7669_v40  ;;  %v752_v11 = vsel %vm9688_vm1, %v749_v56, %v751_v59  ;;  %vm8146_vm7 = vcmp.ge.s32.totalorder %v367_v60, 1  ;;  %v754_v15 = vsel %vm9688_vm1, %v751_v59, %v753_v61  ;;  %vm8168_vm10 = vmpackc.low %vm9691_vm3, %vm8140_vm6  ;;  %v757_v26 = vrot.slane %v8122_v2, 7  ;;  %v7702_v28 = vld [vmem:[%s9683_s1 + $0x1f8] sm:$0xff]  }
  0x21   : > { %6603 = vmatprep.subr.bf16.mxu1 %v7670_v46  ;;  %vm8064_vm14 = vcmp.ge.s32.totalorder %v325_v25, 1  ;;  %v9739_v23 = vsel %vm8168_vm10, 4294967295, %v9738_v23  ;;  %v759_v27 = vrot.slane %v8135_v6, 7  ;;  %vm8179_vm11 = vmpackc.low %vm9691_vm3, %vm8146_vm7  ;;  %v761_v37 = vrot.slane %v8151_v13, 7 }
  0x22   : > { %vm8098_vm0 = vmpackc.low %vm9691_vm3, %vm8064_vm14 }
  0x23   : > { %6508 = vmatpush3.bf16.msra.mxu0 %v7669_v40  ;;  %v9731_v53 = vsel %vm8098_vm0, 4294967295, %v9730_v53  ;;  %v7685_v40 = vld [vmem:[%s9683_s1 + $0x38] sm:$0xff]   ;;  %v762_v59 = vsel %vm9688_vm1, %v759_v27, %v761_v37 }
  0x24   : > { %6604 = vmatpush3.bf16.msra.mxu1 %v7670_v46  ;;  %6541 = vmatprep.subr.bf16.mxu0 %v7671_v50  ;;  %v748_v46 = vsel %vm9688_vm1, %v745_v30, %v747_v33  ;;  %v9740_v30 = vmov 0 }
  0x25   : > { %6637 = vmatprep.subr.bf16.mxu1 %v7672_v54  ;;  %v8104_v55 = vpack.c.bf16 %v748_v46, %v746_v45  ;;  %v9741_v30 = vsel %vm8179_vm11, 4294967295, %v9740_v30  ;;  %v7686_v45 = vld [vmem:[%s9683_s1 + $0xb8] sm:$0xff]  }
  0x26   : > { %6510 = vmatmul.mubr.msk.bf16.vlgmr.msra.gmra.mrb[0].mxu0 %vm7935_vm5, %v7939_v36 }
  0x27   : > { %6606 = vmatmul.mubr.msk.bf16.vlgmr.msra.gmra.mrb[0].mxu1 %vm7980_vm8, %v7977_v63  ;;  %6542 = vmatpush3.bf16.msra.mxu0 %v7671_v50  ;;  %v8087_v50 = vld [vmem:[%s7893_s10 + $0x98] sm:$0xff] }
  0x28   : > { %6638 = vmatpush3.bf16.msra.mxu1 %v7672_v54  ;;  %6513 = vmatprep.mubr.msk.bf16.mxu0 %vm7980_vm8, %v7977_v63  ;;  %v8102_v54 = vpack.c.bf16 %v744_v42, %v742_v41  ;;  %v755_v62 = vrot.slane %v8087_v50, 7  ;;  %v8194_v41 = vld [vmem:[%s7893_s10 + $0xc0] sm:$0xff]  ;;  %v8197_v42 = vld [vmem:[%s7893_s10 + $0xc8] sm:$0xff] }
  0x29   : > { %6609 = vmatprep.mubr.msk.bf16.mxu1 %vm7994_vm9, %v7984_v3  ;;  %6543 = vmatprep.subr.bf16.mxu0 %v7673_v4  ;;  %v767_v8 = vrot.slane %v8197_v42, 7 }
  0x2a   : > { %6639 = vmatprep.subr.bf16.mxu1 %v7674_v10  ;;  %v756_v18 = vsel %vm9688_vm1, %v753_v61, %v755_v62  ;;  %v758_v48 = vsel %vm9688_vm1, %v755_v62, %v757_v26  ;;  %v8233_v61 = vld [vmem:[%s9683_s1 + $0x100] sm:$0xff]   ;;  %v231_v62 = vadd.s32 208, %v7871_v7 }
  0x2b   : > { %6544 = vmatpush3.bf16.msra.mxu0 %v7673_v4  ;;  %v225_v4 = vadd.s32 160, %v7871_v7 }
  0x2c   : > { %6640 = vmatpush3.bf16.msra.mxu1 %v7674_v10  ;;  %6545 = vmatprep.subr.bf16.mxu0 %v7675_v12  ;;  %v750_v10 = vsel %vm9688_vm1, %v747_v33, %v749_v56  ;;  %v8183_v33 = vpack.c.bf16 %v756_v18, %v754_v15  ;;  %v8222_v56 = vld [vmem:[%s7893_s10 + $0xd8] sm:$0xff]  ;;  %v769_v15 = vrot.slane %v8213_v47, 7  ;;  %v9748_v18 = vmov 0 }
  0x2d   : > { %6641 = vmatprep.subr.bf16.mxu1 %v7676_v20  ;;  %v381_v21 = vand.u32 15, %v225_v4  ;;  %v8172_v25 = vpack.c.bf16 %v752_v11, %v750_v10  ;;  %v9746_v10 = vmov 0 }
  0x2e   : > { %6514 = vmatmul.mubr.msk.bf16.gmra.mrb[4].mxu0 %vm7994_vm9, %v7984_v3 }
  0x2f   : > { %6610 = vmatmul.mubr.msk.bf16.gmra.mrb[4].mxu1 %vm8037_vm12, %v8032_v24  ;;  %6517 = vmatprep.mubr.msk.bf16.mxu0 %vm8037_vm12, %v8032_v24  ;;  %vm8208_vm14 = vcmp.ge.s32.totalorder %v381_v21, 1  ;;  %v423_v21 = vand.u32 15, %v231_v62 }
  0x30   : > { %6613 = vmatprep.mubr.msk.bf16.mxu1 %vm8045_vm13, %v8041_v29  ;;  %6546 = vmatpush3.bf16.msra.mxu0 %v7675_v12  ;;  %vm8248_vm6 = vmpackc.low %vm9691_vm3, %vm8208_vm14 }
  0x31   : > { %6642 = vmatpush3.bf16.msra.mxu1 %v7676_v20  ;;  %6547 = vmatprep.subr.bf16.mxu0 %v7677_v38  ;;  %v7683_v20 = vld [vmem:[%s9683_s1 + $0x30] sm:$0xff]   ;;  %v9747_v10 = vsel %vm8248_vm6, 4294967295, %v9746_v10 }
  0x32   : > { %6643 = vmatprep.subr.bf16.mxu1 %v7678_v39 }
  0x34   : > { %6548 = vmatpush3.bf16.msra.mxu0 %v7677_v38  ;;  %v763_v38 = vrot.slane %v8154_v14, 7 }
  0x35   : > { %6644 = vmatpush3.bf16.msra.mxu1 %v7678_v39  ;;  %6549 = vmatprep.subr.bf16.mxu0 %v7679_v51  ;;  %v395_v39 = vand.u32 15, %v227_v19  ;;  %v771_v19 = vrot.slane %v8222_v56, 7 }
  0x36   : > { %6518 = vmatmul.mubr.msk.bf16.gmra.mrb[8].mxu0 %vm8045_vm13, %v8041_v29  ;;  %6645 = vmatprep.subr.bf16.mxu1 %v7680_v52  ;;  %v764_v60 = vsel %vm9688_vm1, %v761_v37, %v763_v38 }
  0x37   : > { %6614 = vmatmul.mubr.msk.bf16.gmra.mrb[8].mxu1 %vm8098_vm0, %v8102_v54  ;;  %6521 = vmatprep.mubr.msk.bf16.mxu0 %vm8098_vm0, %v8102_v54  ;;  %vm8224_vm15 = vcmp.ge.s32.totalorder %v395_v39, 1  ;;  %v8252_v11 = vpack.c.bf16 %v764_v60, %v762_v59  ;;  %v772_v46 = vsel %vm9688_vm1, %v769_v15, %v771_v19 }
  0x38   : > { %6617 = vmatprep.mubr.msk.bf16.mxu1 %vm8108_vm2, %v8104_v55  ;;  %6550 = vmatpush3.bf16.msra.mxu0 %v7679_v51  ;;  %v760_v51 = vsel %vm9688_vm1, %v757_v26, %v759_v27  ;;  %vm8258_vm7 = vmpackc.low %vm9691_vm3, %vm8224_vm15  ;;  %v235_v26 = vadd.s32 240, %v7871_v7  ;;  %v8280_v27 = vld [vmem:[%s7893_s10 + $0xe8] sm:$0xff]  ;;  %vm647_vm15 = vcmp.ge.s32.totalorder %v423_v21, 1  ;;  %v7712_v21 = vld [vmem:[%s9683_s1 + $0x160] sm:$0xff]  }
  0x39   : > { %6646 = vmatpush3.bf16.msra.mxu1 %v7680_v52  ;;  %6551 = vmatprep.subr.bf16.mxu0 %v7681_v1  ;;  %v229_v52 = vadd.s32 192, %v7871_v7  ;;  %v8241_v4 = vpack.c.bf16 %v760_v51, %v758_v48  ;;  %v9749_v18 = vsel %vm8258_vm7, 4294967295, %v9748_v18  ;;  %v8293_v51 = vld [vmem:[%s7893_s10 + $0xf8] sm:$0xff]  ;;  %v775_v62 = vrot.slane %v8280_v27, 7 }
  0x3a   : > { %6647 = vmatprep.subr.bf16.mxu1 %v7682_v5 }
  0x3b   : > { %v409_v12 = vand.u32 15, %v229_v52  ;;  %v451_v52 = vand.u32 15, %v235_v26 }
  0x3c   : > { %6552 = vmatpush3.bf16.msra.mxu0 %v7681_v1  ;;  %v8239_v1 = vld [vmem:[%s9683_s1 + $0x1c0] sm:$0xff]  }
  0x3d   : > { %6648 = vmatpush3.bf16.msra.mxu1 %v7682_v5  ;;  %6553 = vmatprep.subr.bf16.mxu0 %v7683_v20  ;;  %v765_v5 = vrot.slane %v8194_v41, 7  ;;  %vm645_vm14 = vcmp.ge.s32.totalorder %v409_v12, 1  ;;  %v779_v12 = vrot.slane %v8293_v51, 7 }
  0x3e   : > { %6522 = vmatmul.mubr.msk.bf16.gmra.mrb[12].mxu0 %vm8108_vm2, %v8104_v55  ;;  %6649 = vmatprep.subr.bf16.mxu1 %v7684_v22 }
  0x3f   : > { %6618 = vmatmul.mubr.msk.bf16.gmra.mrb[12].mxu1 %vm8168_vm10, %v8172_v25  ;;  %6525 = vmatprep.mubr.msk.bf16.mxu0 %vm8168_vm10, %v8172_v25  ;;  %v766_v37 = vsel %vm9688_vm1, %v763_v38, %v765_v5  ;;  %v768_v39 = vsel %vm9688_vm1, %v765_v5, %v767_v8  ;;  %vm9756_vm10 = vmmov 1  }
  0x40   : > { %6621 = vmatprep.mubr.msk.bf16.mxu1 %vm8179_vm11, %v8183_v33  ;;  %6554 = vmatpush3.bf16.msra.mxu0 %v7683_v20  ;;  %v233_v20 = vadd.s32 224, %v7871_v7  ;;  %v8295_v58 = vpack.c.bf16 %v768_v39, %v766_v37 }
  0x41   : > { %6650 = vmatpush3.bf16.msra.mxu1 %v7684_v22  ;;  %6555 = vmatprep.subr.bf16.mxu0 %v7685_v40  ;;  %v8269_v22 = vld [vmem:[%s7893_s10 + $0xe0] sm:$0xff] }
  0x42   : > { %6651 = vmatprep.subr.bf16.mxu1 %v7686_v45  ;;  %v437_v48 = vand.u32 15, %v233_v20  ;;  %v773_v59 = vrot.slane %v8269_v22, 7 }
  0x44   : > { %6556 = vmatpush3.bf16.msra.mxu0 %v7685_v40  ;;  %v8288_v40 = vld [vmem:[%s7893_s10 + $0xf0] sm:$0xff] }
  0x45   : > { %6652 = vmatpush3.bf16.msra.mxu1 %v7686_v45  ;;  %6685 = vmatprep.subr.bf16.mxu0 %v8233_v61  ;;  %v770_v45 = vsel %vm9688_vm1, %v767_v8, %v769_v15  ;;  %v777_v5 = vrot.slane %v8288_v40, 7  ;;  %vm8308_vm1 = vmpackc.low %vm9691_vm3, %vm647_vm15  ;;  %vm9754_vm15 = vcmask 1040384  }
  0x46   : > { %6526 = vmatmul.mubr.msk.bf16.gmra.mrb[16].mxu0 %vm8179_vm11, %v8183_v33  ;;  %6781 = vmatprep.subr.bf16.mxu1 %v8239_v1  ;;  %v8303_v60 = vpack.c.bf16 %v772_v46, %v770_v45  ;;  %vm649_vm11 = vcmp.ge.s32.totalorder %v437_v48, 1  ;;  %v774_v15 = vsel %vm9754_vm15, %v771_v19, %v773_v59  ;;  %v7824_v19 = vmov 0.0|0.0   ;;  %v7689_v48 = vld [vmem:[%s9683_s1 + $0x108] sm:$0xff]  }
  0x47   : > { %6622 = vmatmul.mubr.msk.bf16.gmra.mrb[16].mxu1 %vm8248_vm6, %v8241_v4  ;;  %6529 = vmatprep.mubr.msk.bf16.mxu0 %vm8248_vm6, %v8241_v4  ;;  %vm8299_vm6 = vmpackc.low %vm9691_vm3, %vm645_vm14  ;;  %vm651_vm14 = vcmp.ge.s32.totalorder %v451_v52, 1  ;;  %v7690_v52 = vld [vmem:[%s9683_s1 + $0x1c8] sm:$0xff]  }
  0x48   : > { %6625 = vmatprep.mubr.msk.bf16.mxu1 %vm8258_vm7, %v8252_v11  ;;  %vm9755_vm3 = vmmov %vm9754_vm15 }
  0x49   : > { %v776_v20 = vsel %vm9755_vm3, %v773_v59, %v775_v62  ;;  %vm8328_vm2 = vmpackc.low %vm9756_vm10, %vm649_vm11  ;;  %v7691_v59 = vld [vmem:[%s9683_s1 + $0x110] sm:$0xff]  }
  0x4a   : > { %vm9760_vm0 = vmmov %vm9755_vm3  ;;  %v8339_v45 = vpack.c.bf16 %v776_v20, %v774_v15  ;;  %v7710_v15 = vld [vmem:[%s9683_s1 + $0x158] sm:$0xff]   ;;  %v7711_v20 = vld [vmem:[%s9683_s1 + $0x1a0] sm:$0xff]  }
  0x4b   : > { %v780_v37 = vsel %vm9760_vm0, %v777_v5, %v779_v12  ;;  %vm8335_vm13 = vmpackc.low %vm9756_vm10, %vm651_vm14  ;;  %vm9769_vm0 = vnez %v9749_v18  ;;  %v8552_v18 = vld [vmem:[%s7893_s10 + $0x30] sm:$0xff]  ;;  %v7709_v12 = vld [vmem:[%s9683_s1 + $0x198] sm:$0xff]  }
  0x4e   : > { %6530 = vmatmul.mubr.msk.bf16.gmra.mrb[20].mxu0 %vm8258_vm7, %v8252_v11  ;;  %vm9759_vm7 = vmmov %vm9755_vm3  ;;  %vm9763_vm3 = vnez %v9727_v34  ;;  %v7704_v34 = vld [vmem:[%s9683_s1 + $0x140] sm:$0xff]  }
  0x4f   : > { %6626 = vmatmul.mubr.msk.bf16.gmra.mrb[20].mxu1 %vm8299_vm6, %v8295_v58  ;;  %6533 = vmatprep.mubr.msk.bf16.mxu0 %vm8299_vm6, %v8295_v58  ;;  %v778_v26 = vsel %vm9759_vm7, %v775_v62, %v777_v5  ;;  %v7692_v62 = vld [vmem:[%s9683_s1 + $0x1d0] sm:$0xff]   ;;  %v8565_v5 = vld [vmem:[%s7893_s10 + $0x48] sm:$0xff] }
  0x50   : > { %6629 = vmatprep.mubr.msk.bf16.mxu1 %vm8308_vm1, %v8303_v60  ;;  %v8341_v46 = vpack.c.bf16 %v780_v37, %v778_v26  ;;  %v8588_v26 = vld [vmem:[%s7893_s10 + $0x50] sm:$0xff]  ;;  %v8591_v37 = vld [vmem:[%s7893_s10 + $0x58] sm:$0xff] }
  0x51   : > { %v8595_v39 = vpack.c.bf16 %v8591_v37, %v8588_v26 }
  0x56   : > { %6534 = vmatmul.mubr.msk.bf16.gmra.mrb[24].mxu0 %vm8308_vm1, %v8303_v60 }
  0x57   : > { %6630 = vmatmul.mubr.msk.bf16.gmra.mrb[24].mxu1 %vm8328_vm2, %v8339_v45  ;;  %6537 = vmatprep.mubr.msk.bf16.mxu0 %vm8328_vm2, %v8339_v45 }
  0x58   : > { %6633 = vmatprep.mubr.msk.bf16.mxu1 %vm8335_vm13, %v8341_v46 }
  0x5e   : > { %6538 = vmatmul.mubr.msk.bf16.gmra.mrb[28].mxu0 %vm8335_vm13, %v8341_v46 }
  0x5f   : > { %6634 = vmatmul.mubr.bf16.gmra.mrb[28].mxu1 %v7824_v19  ;;  %6557 = vmatprep.mubr.bf16.mxu0 %v7824_v19 }
  0x60   : > { %6653 = vmatprep.mubr.msk.bf16.mxu1 %vm7924_vm4, %v7928_v32 }
  0x66   : > { %6558 = vmatmul.mubr.msk.bf16.vlgmr.msra.gmra.mrb[0].mxu0 %vm7924_vm4, %v7928_v32  ;;  %v7694_v32 = vld [vmem:[%s9683_s1 + $0x1d8] sm:$0xff]   ;;  %vm9764_vm4 = vnez %v9731_v53  ;;  %v8498_v53 = vld [vmem:[%s7893_s10] sm:$0xff] }
  0x67   : > { %6654 = vmatmul.mubr.msk.bf16.vlgmr.msra.gmra.mrb[0].mxu1 %vm7935_vm5, %v7939_v36  ;;  %6686 = vmatpush3.bf16.msra.mxu0 %v8233_v61 }
  0x68   : > { %6782 = vmatpush3.bf16.msra.mxu1 %v8239_v1  ;;  %6561 = vmatprep.mubr.msk.bf16.mxu0 %vm7935_vm5, %v7939_v36  ;;  %v7696_v36 = vld [vmem:[%s9683_s1 + $0x1e0] sm:$0xff]   ;;  %vm9765_vm5 = vnez %v9733_v57  ;;  %v8516_v57 = vld [vmem:[%s7893_s10 + $0x10] sm:$0xff]  ;;  %v7705_v1 = vld [vmem:[%s9683_s1 + $0x188] sm:$0xff]  }
  0x69   : > { %6657 = vmatprep.mubr.msk.bf16.mxu1 %vm7980_vm8, %v7977_v63  ;;  %6687 = vmatprep.subr.bf16.mxu0 %v7689_v48 }
  0x6a   : > { %6783 = vmatprep.subr.bf16.mxu1 %v7690_v52 }
  0x6b   : > { %6688 = vmatpush3.bf16.msra.mxu0 %v7689_v48  ;;  %v7714_v48 = vld [vmem:[%s9683_s1 + $0x168] sm:$0xff]  }
  0x6c   : > { %6784 = vmatpush3.bf16.msra.mxu1 %v7690_v52  ;;  %6689 = vmatprep.subr.bf16.mxu0 %v7691_v59  ;;  %v8618_v52 = vld [vmem:[%s7893_s10 + $0x70] sm:$0xff] }
  0x6d   : > { %6785 = vmatprep.subr.bf16.mxu1 %v7692_v62 }
  0x6e   : > { %6562 = vmatmul.mubr.msk.bf16.gmra.mrb[4].mxu0 %vm7980_vm8, %v7977_v63  ;;  %v7697_v63 = vld [vmem:[%s9683_s1 + $0x128] sm:$0xff]   ;;  %vm9766_vm8 = vnez %v9739_v23  ;;  %v8519_v23 = vld [vmem:[%s7893_s10 + $0x18] sm:$0xff] }
  0x6f   : > { %6658 = vmatmul.mubr.msk.bf16.gmra.mrb[4].mxu1 %vm7994_vm9, %v7984_v3  ;;  %6565 = vmatprep.mubr.msk.bf16.mxu0 %vm7994_vm9, %v7984_v3  ;;  %v7699_v3 = vld [vmem:[%s9683_s1 + $0x130] sm:$0xff]   ;;  %vm9767_vm9 = vnez %v9741_v30  ;;  %v8526_v30 = vld [vmem:[%s7893_s10 + $0x20] sm:$0xff] }
  0x70   : > { %6661 = vmatprep.mubr.msk.bf16.mxu1 %vm8037_vm12, %v8032_v24  ;;  %6690 = vmatpush3.bf16.msra.mxu0 %v7691_v59  ;;  %v8621_v59 = vld [vmem:[%s7893_s10 + $0x78] sm:$0xff] }
  0x71   : > { %6786 = vmatpush3.bf16.msra.mxu1 %v7692_v62  ;;  %6691 = vmatprep.subr.bf16.mxu0 %v7693_v31  ;;  %v8625_v62 = vpack.c.bf16 %v8621_v59, %v8618_v52 }
  0x72   : > { %6787 = vmatprep.subr.bf16.mxu1 %v7694_v32 }
  0x74   : > { %6692 = vmatpush3.bf16.msra.mxu0 %v7693_v31  ;;  %v8629_v31 = vpack.c.bf16 %v8074_v44, %v8071_v43  ;;  %v7720_v43 = vld [vmem:[%s9683_s1 + $0x2c0] sm:$0xff]  }
  0x75   : > { %6788 = vmatpush3.bf16.msra.mxu1 %v7694_v32  ;;  %6693 = vmatprep.subr.bf16.mxu0 %v7695_v35  ;;  %v7717_v32 = vld [vmem:[%s9683_s1 + $0x1b8] sm:$0xff]   ;;  %v7719_v44 = vld [vmem:[%s9683_s1 + $0x200] sm:$0xff]  }
  0x76   : > { %6566 = vmatmul.mubr.msk.bf16.gmra.mrb[8].mxu0 %vm8037_vm12, %v8032_v24  ;;  %6789 = vmatprep.subr.bf16.mxu1 %v7696_v36  ;;  %v7701_v24 = vld [vmem:[%s9683_s1 + $0x138] sm:$0xff]   ;;  %vm9768_vm12 = vnez %v9747_v10  ;;  %v7707_v10 = vld [vmem:[%s9683_s1 + $0x190] sm:$0xff]  }
  0x77   : > { %6662 = vmatmul.mubr.msk.bf16.gmra.mrb[8].mxu1 %vm9763_vm3, %v8041_v29  ;;  %6569 = vmatprep.mubr.msk.bf16.mxu0 %vm9763_vm3, %v8041_v29  ;;  %v7703_v29 = vld [vmem:[%s9683_s1 + $0x180] sm:$0xff]  }
  0x78   : > { %6665 = vmatprep.mubr.msk.bf16.mxu1 %vm9764_vm4, %v8102_v54  ;;  %6694 = vmatpush3.bf16.msra.mxu0 %v7695_v35  ;;  %v7718_v35 = vld [vmem:[%s9683_s1 + $0x178] sm:$0xff]  }
  0x79   : > { %6790 = vmatpush3.bf16.msra.mxu1 %v7696_v36  ;;  %6695 = vmatprep.subr.bf16.mxu0 %v7697_v63  ;;  %v8649_v36 = vpack.c.bf16 %v8087_v50, %v8084_v49  ;;  %v8661_v49 = vpack.c.bf16 %v8154_v14, %v8151_v13  ;;  %v8665_v50 = vpack.c.bf16 %v8197_v42, %v8194_v41  ;;  %v7721_v14 = vld [vmem:[%s9683_s1 + $0x208] sm:$0xff]   ;;  %v7724_v42 = vld [vmem:[%s9683_s1 + $0x2d0] sm:$0xff]  }
  0x7a   : > { %6791 = vmatprep.subr.bf16.mxu1 %v7698_v0  ;;  %v8685_v13 = vpack.c.bf16 %v8293_v51, %v8288_v40  ;;  %v7722_v41 = vld [vmem:[%s9683_s1 + $0x2c8] sm:$0xff]   ;;  %v7728_v40 = vld [vmem:[%s9683_s1 + $0x2e0] sm:$0xff]  }
  0x7b   : > { %v7729_v51 = vld [vmem:[%s9683_s1 + $0x228] sm:$0xff]  }
  0x7c   : > { %6696 = vmatpush3.bf16.msra.mxu0 %v7697_v63  ;;  %v8653_v63 = vpack.c.bf16 %v8135_v6, %v8122_v2  ;;  %v8673_v2 = vpack.c.bf16 %v8222_v56, %v8213_v47  ;;  %v8677_v6 = vpack.c.bf16 %v8280_v27, %v8269_v22  ;;  %v7723_v47 = vld [vmem:[%s9683_s1 + $0x210] sm:$0xff]   ;;  %v7725_v56 = vld [vmem:[%s9683_s1 + $0x218] sm:$0xff]   ;;  %v7727_v27 = vld [vmem:[%s9683_s1 + $0x220] sm:$0xff]  }
  0x7d   : > { %6792 = vmatpush3.bf16.msra.mxu1 %v7698_v0  ;;  %6697 = vmatprep.subr.bf16.mxu0 %v7699_v3  ;;  %v7726_v22 = vld [vmem:[%s9683_s1 + $0x2d8] sm:$0xff]   ;;  %v7730_v0 = vld [vmem:[%s9683_s1 + $0x2e8] sm:$0xff]  }
  0x7e   : > { %6570 = vmatmul.mubr.msk.bf16.gmra.mrb[12].mxu0 %vm9764_vm4, %v8102_v54  ;;  %6793 = vmatprep.subr.bf16.mxu1 %v7700_v9  ;;  %v8501_v54 = vld [vmem:[%s7893_s10 + $0x8] sm:$0xff] }
  0x7f   : > { %6666 = vmatmul.mubr.msk.bf16.gmra.mrb[12].mxu1 %vm9765_vm5, %v8104_v55  ;;  %6573 = vmatprep.mubr.msk.bf16.mxu0 %vm9765_vm5, %v8104_v55  ;;  %v8505_v55 = vpack.c.bf16 %v8501_v54, %v8498_v53 }
  0x80   : > { %6669 = vmatprep.mubr.msk.bf16.mxu1 %vm9766_vm8, %v8172_v25  ;;  %6698 = vmatpush3.bf16.msra.mxu0 %v7699_v3  ;;  %v7731_v3 = vld [vmem:[%s9683_s1 + $0x230] sm:$0xff]  }
  0x81   : > { %6794 = vmatpush3.bf16.msra.mxu1 %v7700_v9  ;;  %6699 = vmatprep.subr.bf16.mxu0 %v7701_v24  ;;  %v7732_v9 = vld [vmem:[%s9683_s1 + $0x2f0] sm:$0xff]  }
  0x82   : > { %6795 = vmatprep.subr.bf16.mxu1 %v7702_v28 }
  0x84   : > { %6700 = vmatpush3.bf16.msra.mxu0 %v7701_v24  ;;  %v7733_v24 = vld [vmem:[%s9683_s1 + $0x238] sm:$0xff]  }
  0x85   : > { %6796 = vmatpush3.bf16.msra.mxu1 %v7702_v28  ;;  %6733 = vmatprep.subr.bf16.mxu0 %v7703_v29  ;;  %v7734_v28 = vld [vmem:[%s9683_s1 + $0x2f8] sm:$0xff]  }
  0x86   : > { %6574 = vmatmul.mubr.msk.bf16.gmra.mrb[16].mxu0 %vm9766_vm8, %v8172_v25  ;;  %6829 = vmatprep.subr.bf16.mxu1 %v7704_v34  ;;  %v8523_v25 = vpack.c.bf16 %v8519_v23, %v8516_v57 }
  0x87   : > { %6670 = vmatmul.mubr.msk.bf16.gmra.mrb[16].mxu1 %vm9767_vm9, %v8183_v33  ;;  %6577 = vmatprep.mubr.msk.bf16.mxu0 %vm9767_vm9, %v8183_v33  ;;  %v8529_v33 = vld [vmem:[%s7893_s10 + $0x28] sm:$0xff] }
  0x88   : > { %6673 = vmatprep.mubr.msk.bf16.mxu1 %vm9768_vm12, %v8241_v4  ;;  %v8533_v61 = vpack.c.bf16 %v8529_v33, %v8526_v30 }
  0x8e   : > { %6578 = vmatmul.mubr.msk.bf16.gmra.mrb[20].mxu0 %vm9768_vm12, %v8241_v4  ;;  %v7706_v4 = vld [vmem:[%s9683_s1 + $0x148] sm:$0xff]  }
  0x8f   : > { %6674 = vmatmul.mubr.msk.bf16.gmra.mrb[20].mxu1 %vm9769_vm0, %v8252_v11  ;;  %6581 = vmatprep.mubr.msk.bf16.mxu0 %vm9769_vm0, %v8252_v11  ;;  %v7708_v11 = vld [vmem:[%s9683_s1 + $0x150] sm:$0xff]  }
  0x90   : > { %6677 = vmatprep.mubr.msk.bf16.mxu1 %vm8299_vm6, %v8295_v58 }
  0x96   : > { %6582 = vmatmul.mubr.msk.bf16.gmra.mrb[24].mxu0 %vm8299_vm6, %v8295_v58  ;;  %v8555_v58 = vld [vmem:[%s7893_s10 + $0x38] sm:$0xff] }
  0x97   : > { %6678 = vmatmul.mubr.msk.bf16.gmra.mrb[24].mxu1 %vm8308_vm1, %v8303_v60  ;;  %6585 = vmatprep.mubr.msk.bf16.mxu0 %vm8308_vm1, %v8303_v60  ;;  %v8559_v38 = vpack.c.bf16 %v8555_v58, %v8552_v18  ;;  %v8562_v60 = vld [vmem:[%s7893_s10 + $0x40] sm:$0xff]  ;;  %vm9703_vm1 = vcmask 1046528  }
  0x98   : > { %6681 = vmatprep.mubr.msk.bf16.mxu1 %vm8328_vm2, %v8339_v45  ;;  %v8569_v8 = vpack.c.bf16 %v8565_v5, %v8562_v60 }
  0x9e   : > { %6586 = vmatmul.mubr.msk.bf16.gmra.mrb[28].mxu0 %vm8328_vm2, %v8339_v45  ;;  %v8599_v45 = vpack.c.bf16 %v8017_v17, %v8014_v16  ;;  %v7715_v16 = vld [vmem:[%s9683_s1 + $0x1b0] sm:$0xff]  }
  0x9f   : > { %6682 = vmatmul.mubr.msk.bf16.gmra.mrb[28].mxu1 %vm8335_vm13, %v8341_v46  ;;  %6701 = vmatprep.mubr.bf16.mxu0 %v7824_v19  ;;  %v7713_v46 = vld [vmem:[%s9683_s1 + $0x1a8] sm:$0xff]   ;;  %v7716_v17 = vld [vmem:[%s9683_s1 + $0x170] sm:$0xff]  }
  0xa0   : > { %6797 = vmatprep.mubr.bf16.mxu1 %v8505_v55 }
  0xa6   : > { %6702 = vmatmul.mubr.bf16.vlgmr.msra.gmra.mrb[0].mxu0 %v8505_v55 }
  0xa7   : > { %6798 = vmatmul.mubr.bf16.vlgmr.msra.gmra.mrb[32].mxu1 %v8523_v25  ;;  %6734 = vmatpush3.bf16.msra.mxu0 %v7703_v29  ;;  %v7735_v29 = vld [vmem:[%s9683_s1 + $0x280] sm:$0xff]  }
  0xa8   : > { %6830 = vmatpush3.bf16.msra.mxu1 %v7704_v34  ;;  %6705 = vmatprep.mubr.bf16.mxu0 %v8523_v25  ;;  %v7736_v34 = vld [vmem:[%s9683_s1 + $0x240] sm:$0xff]  }
  0xa9   : > { %6801 = vmatprep.mubr.bf16.mxu1 %v8533_v61  ;;  %6735 = vmatprep.subr.bf16.mxu0 %v7705_v1 }
  0xaa   : > { %6831 = vmatprep.subr.bf16.mxu1 %v7706_v4 }
  0xab   : > { %6736 = vmatpush3.bf16.msra.mxu0 %v7705_v1  ;;  %v3788_v1 = vrot.slane %v8519_v23, 1 }
  0xac   : > { %6832 = vmatpush3.bf16.msra.mxu1 %v7706_v4  ;;  %6737 = vmatprep.subr.bf16.mxu0 %v7707_v10  ;;  %v3790_v4 = vrot.slane %v8526_v30, 1 }
  0xad   : > { %6833 = vmatprep.subr.bf16.mxu1 %v7708_v11 }
  0xae   : > { %6706 = vmatmul.mubr.bf16.gmra.mrb[4].mxu0 %v8533_v61  ;;  %v3791_v23 = vsel %vm9703_vm1, %v3788_v1, %v3790_v4 }
  0xaf   : > { %6802 = vmatmul.mubr.bf16.gmra.mrb[36].mxu1 %v8559_v38  ;;  %6709 = vmatprep.mubr.bf16.mxu0 %v8559_v38 }
  0xb0   : > { %6805 = vmatprep.mubr.bf16.mxu1 %v8569_v8  ;;  %6738 = vmatpush3.bf16.msra.mxu0 %v7707_v10  ;;  %v3786_v10 = vrot.slane %v8516_v57, 1  ;;  %v3794_v57 = vrot.slane %v8552_v18, 1 }
  0xb1   : > { %6834 = vmatpush3.bf16.msra.mxu1 %v7708_v11  ;;  %6739 = vmatprep.subr.bf16.mxu0 %v7709_v12 }
  0xb2   : > { %6835 = vmatprep.subr.bf16.mxu1 %v7710_v15  ;;  %v3789_v11 = vsel %vm9703_vm1, %v3786_v10, %v3788_v1 }
  0xb4   : > { %6740 = vmatpush3.bf16.msra.mxu0 %v7709_v12  ;;  %v7737_v12 = vld [vmem:[%s9683_s1 + $0x288] sm:$0xff]  }
  0xb5   : > { %6836 = vmatpush3.bf16.msra.mxu1 %v7710_v15  ;;  %6741 = vmatprep.subr.bf16.mxu0 %v7711_v20  ;;  %v8783_v15 = vpack.c.bf16 %v3791_v23, %v3789_v11  ;;  %v214_v11 = vadd.s32 72, %v7871_v7  ;;  %v3796_v23 = vrot.slane %v8555_v58, 1 }
  0xb6   : > { %6710 = vmatmul.mubr.bf16.gmra.mrb[8].mxu0 %v8569_v8  ;;  %6837 = vmatprep.subr.bf16.mxu1 %v7712_v21 }
  0xb7   : > { %6806 = vmatmul.mubr.bf16.gmra.mrb[40].mxu1 %v8595_v39  ;;  %6713 = vmatprep.mubr.bf16.mxu0 %v8595_v39 }
  0xb8   : > { %6809 = vmatprep.mubr.bf16.mxu1 %v8599_v45  ;;  %6742 = vmatpush3.bf16.msra.mxu0 %v7711_v20  ;;  %v7738_v20 = vld [vmem:[%s9683_s1 + $0x248] sm:$0xff]  }
  0xb9   : > { %6838 = vmatpush3.bf16.msra.mxu1 %v7712_v21  ;;  %6743 = vmatprep.subr.bf16.mxu0 %v7713_v46  ;;  %v7740_v21 = vld [vmem:[%s9683_s1 + $0x250] sm:$0xff]  }
  0xba   : > { %6839 = vmatprep.subr.bf16.mxu1 %v7714_v48 }
  0xbc   : > { %6744 = vmatpush3.bf16.msra.mxu0 %v7713_v46  ;;  %v7739_v46 = vld [vmem:[%s9683_s1 + $0x290] sm:$0xff]  }
  0xbd   : > { %6840 = vmatpush3.bf16.msra.mxu1 %v7714_v48  ;;  %6745 = vmatprep.subr.bf16.mxu0 %v7715_v16  ;;  %v7741_v48 = vld [vmem:[%s9683_s1 + $0x298] sm:$0xff]  }
  0xbe   : > { %6714 = vmatmul.mubr.bf16.gmra.mrb[12].mxu0 %v8599_v45  ;;  %6841 = vmatprep.subr.bf16.mxu1 %v7716_v17 }
  0xbf   : > { %6810 = vmatmul.mubr.bf16.gmra.mrb[44].mxu1 %v8625_v62  ;;  %6717 = vmatprep.mubr.bf16.mxu0 %v8625_v62 }
  0xc0   : > { %6813 = vmatprep.mubr.bf16.mxu1 %v8629_v31  ;;  %6746 = vmatpush3.bf16.msra.mxu0 %v7715_v16  ;;  %v7742_v16 = vld [vmem:[%s9683_s1 + $0x258] sm:$0xff]  }
  0xc1   : > { %6842 = vmatpush3.bf16.msra.mxu1 %v7716_v17  ;;  %6747 = vmatprep.subr.bf16.mxu0 %v7717_v32  ;;  %v7743_v17 = vld [vmem:[%s9683_s1 + $0x2a0] sm:$0xff]  }
  0xc2   : > { %6843 = vmatprep.subr.bf16.mxu1 %v7718_v35 }
  0xc4   : > { %6748 = vmatpush3.bf16.msra.mxu0 %v7717_v32  ;;  %v7744_v32 = vld [vmem:[%s9683_s1 + $0x260] sm:$0xff]  }
  0xc5   : > { %6844 = vmatpush3.bf16.msra.mxu1 %v7718_v35  ;;  %6973 = vmatprep.subr.bf16.mxu0 %v7720_v43  ;;  %v7745_v35 = vld [vmem:[%s9683_s1 + $0x2a8] sm:$0xff]  }
  0xc6   : > { %6718 = vmatmul.mubr.bf16.gmra.mrb[16].mxu0 %v8629_v31  ;;  %6877 = vmatprep.subr.bf16.mxu1 %v7719_v44 }
  0xc7   : > { %6814 = vmatmul.mubr.bf16.gmra.mrb[48].mxu1 %v8649_v36  ;;  %6721 = vmatprep.mubr.bf16.mxu0 %v8649_v36 }
  0xc8   : > { %6817 = vmatprep.mubr.bf16.mxu1 %v8653_v63 }
  0xce   : > { %6722 = vmatmul.mubr.bf16.gmra.mrb[20].mxu0 %v8653_v63 }
  0xcf   : > { %6818 = vmatmul.mubr.bf16.gmra.mrb[52].mxu1 %v8661_v49  ;;  %6725 = vmatprep.mubr.bf16.mxu0 %v8661_v49 }
  0xd0   : > { %6821 = vmatprep.mubr.bf16.mxu1 %v8665_v50 }
  0xd6   : > { %6726 = vmatmul.mubr.bf16.gmra.mrb[24].mxu0 %v8665_v50 }
  0xd7   : > { %6822 = vmatmul.mubr.bf16.gmra.mrb[56].mxu1 %v8673_v2  ;;  %6729 = vmatprep.mubr.bf16.mxu0 %v8673_v2 }
  0xd8   : > { %6825 = vmatprep.mubr.bf16.mxu1 %v8677_v6 }
  0xde   : > { %6730 = vmatmul.mubr.bf16.gmra.mrb[28].mxu0 %v8677_v6 }
  0xdf   : > { %6826 = vmatmul.mubr.bf16.gmra.mrb[60].mxu1 %v8685_v13  ;;  %6749 = vmatprep.mubr.bf16.mxu0 %v8505_v55 }
  0xe0   : > { %6845 = vmatprep.mubr.bf16.mxu1 %v7824_v19 }
  0xe6   : > { %6750 = vmatmul.mubr.bf16.vlgmr.msra.gmra.mrb[0].mxu0 %v8523_v25 }
  0xe7   : > { %6846 = vmatmul.mubr.bf16.vlgmr.msra.gmra.mrb[32].mxu1 %v8505_v55  ;;  %6974 = vmatpush3.bf16.msra.mxu0 %v7720_v43  ;;  %v7746_v43 = vld [vmem:[%s9683_s1 + $0x268] sm:$0xff]  }
  0xe8   : > { %6878 = vmatpush3.bf16.msra.mxu1 %v7719_v44  ;;  %6753 = vmatprep.mubr.bf16.mxu0 %v8533_v61  ;;  %v7747_v44 = vld [vmem:[%s9683_s1 + $0x2b0] sm:$0xff]  }
  0xe9   : > { %6849 = vmatprep.mubr.bf16.mxu1 %v8523_v25  ;;  %6879 = vmatprep.subr.bf16.mxu1 %v7721_v14 }
  0xea   : > { %6975 = vmatprep.subr.bf16.mxu0 %v7722_v41 }
  0xeb   : > { %6976 = vmatpush3.bf16.msra.mxu0 %v7722_v41  ;;  %v7749_v41 = vld [vmem:[%s9683_s1 + $0x2b8] sm:$0xff]  }
  0xec   : > { %6880 = vmatpush3.bf16.msra.mxu1 %v7721_v14  ;;  %6977 = vmatprep.subr.bf16.mxu0 %v7724_v42  ;;  %v7748_v14 = vld [vmem:[%s9683_s1 + $0x270] sm:$0xff]  }
  0xed   : > { %6881 = vmatprep.subr.bf16.mxu1 %v7723_v47 }
  0xee   : > { %6754 = vmatmul.mubr.bf16.gmra.mrb[4].mxu0 %v8559_v38 }
  0xef   : > { %6850 = vmatmul.mubr.bf16.gmra.mrb[36].mxu1 %v8533_v61  ;;  %6757 = vmatprep.mubr.bf16.mxu0 %v8569_v8 }
  0xf0   : > { %6853 = vmatprep.mubr.bf16.mxu1 %v8559_v38  ;;  %6882 = vmatpush3.bf16.msra.mxu1 %v7723_v47  ;;  %v7751_v47 = vld [vmem:[%s9683_s1 + $0x300] sm:$0xff]  }
  0xf1   : > { %6978 = vmatpush3.bf16.msra.mxu0 %v7724_v42  ;;  %6883 = vmatprep.subr.bf16.mxu1 %v7725_v56  ;;  %v7750_v42 = vld [vmem:[%s9683_s1 + $0x278] sm:$0xff]  }
  0xf2   : > { %6979 = vmatprep.subr.bf16.mxu0 %v7726_v22 }
  0xf4   : > { %6884 = vmatpush3.bf16.msra.mxu1 %v7725_v56  ;;  %v7752_v56 = vld [vmem:[%s9683_s1 + $0x380] sm:$0xff]  }
  0xf5   : > { %6980 = vmatpush3.bf16.msra.mxu0 %v7726_v22  ;;  %6885 = vmatprep.subr.bf16.mxu1 %v7727_v27  ;;  %v7753_v22 = vld [vmem:[%s9683_s1 + $0x308] sm:$0xff]  }
  0xf6   : > { %6758 = vmatmul.mubr.bf16.gmra.mrb[8].mxu0 %v8595_v39  ;;  %6981 = vmatprep.subr.bf16.mxu0 %v7728_v40 }
  0xf7   : > { %6854 = vmatmul.mubr.bf16.gmra.mrb[40].mxu1 %v8569_v8  ;;  %6761 = vmatprep.mubr.bf16.mxu0 %v8599_v45 }
  0xf8   : > { %6857 = vmatprep.mubr.bf16.mxu1 %v8595_v39  ;;  %6886 = vmatpush3.bf16.msra.mxu1 %v7727_v27  ;;  %v7754_v27 = vld [vmem:[%s9683_s1 + $0x388] sm:$0xff]  }
  0xf9   : > { %6982 = vmatpush3.bf16.msra.mxu0 %v7728_v40  ;;  %6887 = vmatprep.subr.bf16.mxu1 %v7729_v51  ;;  %v7757_v40 = vld [vmem:[%s9683_s1 + $0x318] sm:$0xff]  }
  0xfa   : > { %6983 = vmatprep.subr.bf16.mxu0 %v7730_v0 }
  0xfc   : > { %6888 = vmatpush3.bf16.msra.mxu1 %v7729_v51  ;;  %v7759_v51 = vld [vmem:[%s9683_s1 + $0x320] sm:$0xff]  }
  0xfd   : > { %6984 = vmatpush3.bf16.msra.mxu0 %v7730_v0  ;;  %6889 = vmatprep.subr.bf16.mxu1 %v7731_v3  ;;  %v7762_v0 = vld [vmem:[%s9683_s1 + $0x3a8] sm:$0xff]  }
  0xfe   : > { %6762 = vmatmul.mubr.bf16.gmra.mrb[12].mxu0 %v8625_v62  ;;  %6985 = vmatprep.subr.bf16.mxu0 %v7732_v9 }
  0xff   : > { %6858 = vmatmul.mubr.bf16.gmra.mrb[44].mxu1 %v8599_v45  ;;  %6765 = vmatprep.mubr.bf16.mxu0 %v8629_v31 }
 0x100   : > { %6861 = vmatprep.mubr.bf16.mxu1 %v8625_v62  ;;  %6890 = vmatpush3.bf16.msra.mxu1 %v7731_v3  ;;  %v7763_v3 = vld [vmem:[%s9683_s1 + $0x330] sm:$0xff]  }
 0x101   : > { %6986 = vmatpush3.bf16.msra.mxu0 %v7732_v9  ;;  %6891 = vmatprep.subr.bf16.mxu1 %v7733_v24  ;;  %v7766_v9 = vld [vmem:[%s9683_s1 + $0x3b8] sm:$0xff]  }
 0x102   : > { %6987 = vmatprep.subr.bf16.mxu0 %v7734_v28 }
 0x104   : > { %6892 = vmatpush3.bf16.msra.mxu1 %v7733_v24  ;;  %v7767_v24 = vld [vmem:[%s9683_s1 + $0x340] sm:$0xff]  }
 0x105   : > { %6988 = vmatpush3.bf16.msra.mxu0 %v7734_v28  ;;  %6925 = vmatprep.subr.bf16.mxu1 %v7735_v29  ;;  %v3783_v28 = vrot.slane %v8498_v53, 1 }
 0x106   : > { %6766 = vmatmul.mubr.bf16.gmra.mrb[16].mxu0 %v8649_v36  ;;  %7021 = vmatprep.subr.bf16.mxu0 %v7736_v34 }
 0x107   : > { %6862 = vmatmul.mubr.bf16.gmra.mrb[48].mxu1 %v8629_v31  ;;  %6769 = vmatprep.mubr.bf16.mxu0 %v8653_v63 }
 0x108   : > { %6865 = vmatprep.mubr.bf16.mxu1 %v8649_v36 }
 0x10e   : > { %6770 = vmatmul.mubr.bf16.gmra.mrb[20].mxu0 %v8661_v49 }
 0x10f   : > { %6866 = vmatmul.mubr.bf16.gmra.mrb[52].mxu1 %v8653_v63  ;;  %6773 = vmatprep.mubr.bf16.mxu0 %v8665_v50 }
 0x110   : > { %6869 = vmatprep.mubr.bf16.mxu1 %v8661_v49 }
 0x116   : > { %6774 = vmatmul.mubr.bf16.gmra.mrb[24].mxu0 %v8673_v2 }
 0x117   : > { %6870 = vmatmul.mubr.bf16.gmra.mrb[56].mxu1 %v8665_v50  ;;  %6777 = vmatprep.mubr.bf16.mxu0 %v8677_v6 }
 0x118   : > { %6873 = vmatprep.mubr.bf16.mxu1 %v8673_v2 }
 0x11e   : > { %6778 = vmatmul.mubr.bf16.gmra.mrb[28].mxu0 %v8685_v13 }
 0x11f   : > { %6874 = vmatmul.mubr.bf16.gmra.mrb[60].mxu1 %v8677_v6  ;;  %6989 = vmatprep.mubr.bf16.mxu0 %v8523_v25 }
 0x120   : > { %6893 = vmatprep.mubr.bf16.mxu1 %v8505_v55 }
 0x126   : > { %6990 = vmatmul.mubr.bf16.vlgmr.msra.gmra.mrb[32].mxu0 %v8533_v61 }
 0x127   : > { %6894 = vmatmul.mubr.bf16.vlgmr.msra.gmra.mrb[0].mxu1 %v8523_v25  ;;  %7022 = vmatpush3.bf16.msra.mxu0 %v7736_v34  ;;  %v3792_v34 = vrot.slane %v8529_v33, 1 }
 0x128   : > { %6926 = vmatpush3.bf16.msra.mxu1 %v7735_v29  ;;  %6897 = vmatprep.mubr.bf16.mxu1 %v8533_v61 }
 0x129   : > { %6993 = vmatprep.mubr.bf16.mxu0 %v8559_v38  ;;  %6927 = vmatprep.subr.bf16.mxu1 %v7737_v12  ;;  %v3793_v33 = vsel %vm9703_vm1, %v3790_v4, %v3792_v34  ;;  %v3795_v18 = vsel %vm9703_vm1, %v3792_v34, %v3794_v57  ;;  %v7769_v4 = vld [vmem:[%s9683_s1 + $0x348] sm:$0xff]  }
 0x12a   : > { %7023 = vmatprep.subr.bf16.mxu0 %v7738_v20  ;;  %v8977_v30 = vpack.c.bf16 %v3795_v18, %v3793_v33  ;;  %v7800_v34 = vld [vmem:[%s7893_s10 + $0x88] sm:$0xff] }
 0x12b   : > { %7024 = vmatpush3.bf16.msra.mxu0 %v7738_v20  ;;  %v7778_v18 = vld [vmem:[%s9683_s1 + $0x3e8] sm:$0xff]  }
 0x12c   : > { %6928 = vmatpush3.bf16.msra.mxu1 %v7737_v12  ;;  %7025 = vmatprep.subr.bf16.mxu0 %v7740_v21  ;;  %v3798_v12 = vrot.slane %v8562_v60, 1  ;;  %v7770_v60 = vld [vmem:[%s9683_s1 + $0x3c8] sm:$0xff]  }
 0x12d   : > { %6929 = vmatprep.subr.bf16.mxu1 %v7739_v46 }
 0x12e   : > { %6994 = vmatmul.mubr.bf16.gmra.mrb[36].mxu0 %v8569_v8 }
 0x12f   : > { %6898 = vmatmul.mubr.bf16.gmra.mrb[4].mxu1 %v8559_v38  ;;  %6997 = vmatprep.mubr.bf16.mxu0 %v8595_v39 }
 0x130   : > { %6901 = vmatprep.mubr.bf16.mxu1 %v8569_v8  ;;  %6930 = vmatpush3.bf16.msra.mxu1 %v7739_v46  ;;  %v3802_v46 = vrot.slane %v8588_v26, 1  ;;  %v3799_v26 = vsel %vm9703_vm1, %v3796_v23, %v3798_v12 }
 0x131   : > { %7026 = vmatpush3.bf16.msra.mxu0 %v7740_v21  ;;  %6931 = vmatprep.subr.bf16.mxu1 %v7741_v48  ;;  %v3800_v21 = vrot.slane %v8565_v5, 1  ;;  %v3797_v5 = vsel %vm9703_vm1, %v3794_v57, %v3796_v23  ;;  %v3816_v57 = vrot.slane %v7800_v34, 1  ;;  %v228_v34 = vadd.s32 184, %v7871_v7 }
 0x132   : > { %7027 = vmatprep.subr.bf16.mxu0 %v7742_v16 }
 0x134   : > { %6932 = vmatpush3.bf16.msra.mxu1 %v7741_v48  ;;  %v304_v48 = vand.u32 15, %v214_v11 }
 0x135   : > { %7028 = vmatpush3.bf16.msra.mxu0 %v7742_v16  ;;  %6933 = vmatprep.subr.bf16.mxu1 %v7743_v17  ;;  %v3801_v16 = vsel %vm9703_vm1, %v3798_v12, %v3800_v21 }
 0x136   : > { %6998 = vmatmul.mubr.bf16.gmra.mrb[40].mxu0 %v8599_v45  ;;  %7029 = vmatprep.subr.bf16.mxu0 %v7744_v32  ;;  %vm662_vm3 = vcmp.le.s32.totalorder %v304_v48, 14 }
 0x137   : > { %6902 = vmatmul.mubr.bf16.gmra.mrb[8].mxu1 %v8595_v39  ;;  %7001 = vmatprep.mubr.bf16.mxu0 %v8625_v62  ;;  %vm9026_vm5 = vmpackc.low %vm662_vm3, %vm9756_vm10 }
 0x138   : > { %6905 = vmatprep.mubr.bf16.mxu1 %v8599_v45  ;;  %6934 = vmatpush3.bf16.msra.mxu1 %v7743_v17  ;;  %v3803_v17 = vsel %vm9703_vm1, %v3800_v21, %v3802_v46 }
 0x139   : > { %7030 = vmatpush3.bf16.msra.mxu0 %v7744_v32  ;;  %6935 = vmatprep.subr.bf16.mxu1 %v7745_v35  ;;  %v216_v32 = vadd.s32 88, %v7871_v7 }
 0x13a   : > { %7031 = vmatprep.subr.bf16.mxu0 %v7746_v43 }
 0x13c   : > { %6936 = vmatpush3.bf16.msra.mxu1 %v7745_v35  ;;  %v7772_v35 = vld [vmem:[%s9683_s1 + $0x3d0] sm:$0xff]  }
 0x13d   : > { %7032 = vmatpush3.bf16.msra.mxu0 %v7746_v43  ;;  %6937 = vmatprep.subr.bf16.mxu1 %v7747_v44  ;;  %v7771_v43 = vld [vmem:[%s9683_s1 + $0x350] sm:$0xff]  }
 0x13e   : > { %7002 = vmatmul.mubr.bf16.gmra.mrb[44].mxu0 %v8629_v31  ;;  %7033 = vmatprep.subr.bf16.mxu0 %v7748_v14 }
 0x13f   : > { %6906 = vmatmul.mubr.bf16.gmra.mrb[12].mxu1 %v8625_v62  ;;  %7005 = vmatprep.mubr.bf16.mxu0 %v8649_v36 }
 0x140   : > { %6909 = vmatprep.mubr.bf16.mxu1 %v8629_v31  ;;  %6938 = vmatpush3.bf16.msra.mxu1 %v7747_v44  ;;  %v218_v44 = vadd.s32 104, %v7871_v7 }
 0x141   : > { %7034 = vmatpush3.bf16.msra.mxu0 %v7748_v14  ;;  %6939 = vmatprep.subr.bf16.mxu1 %v7749_v41  ;;  %v9014_v14 = vpack.c.bf16 %v3799_v26, %v3797_v5  ;;  %v226_v5 = vadd.s32 168, %v7871_v7  ;;  %v7779_v26 = vld [vmem:[%s9683_s1 + $0x370] sm:$0xff]  }
 0x142   : > { %7035 = vmatprep.subr.bf16.mxu0 %v7750_v42 }
 0x144   : > { %6940 = vmatpush3.bf16.msra.mxu1 %v7749_v41 }
 0x145   : > { %7036 = vmatpush3.bf16.msra.mxu0 %v7750_v42  ;;  %7069 = vmatprep.subr.bf16.mxu1 %v7751_v47  ;;  %v9021_v42 = vpack.c.bf16 %v3803_v17, %v3801_v16 }
 0x146   : > { %7006 = vmatmul.mubr.bf16.gmra.mrb[48].mxu0 %v8653_v63  ;;  %7165 = vmatprep.subr.bf16.mxu0 %v7752_v56 }
 0x147   : > { %6910 = vmatmul.mubr.bf16.gmra.mrb[16].mxu1 %v8649_v36  ;;  %7009 = vmatprep.mubr.bf16.mxu0 %v8661_v49 }
 0x148   : > { %6913 = vmatprep.mubr.bf16.mxu1 %v8653_v63 }
 0x14e   : > { %7010 = vmatmul.mubr.bf16.gmra.mrb[52].mxu0 %v8665_v50 }
 0x14f   : > { %6914 = vmatmul.mubr.bf16.gmra.mrb[20].mxu1 %v8661_v49  ;;  %7013 = vmatprep.mubr.bf16.mxu0 %v8673_v2 }
 0x150   : > { %6917 = vmatprep.mubr.bf16.mxu1 %v8665_v50 }
 0x156   : > { %7014 = vmatmul.mubr.bf16.gmra.mrb[56].mxu0 %v8677_v6 }
 0x157   : > { %6918 = vmatmul.mubr.bf16.gmra.mrb[24].mxu1 %v8673_v2  ;;  %7017 = vmatprep.mubr.bf16.mxu0 %v8685_v13 }
 0x158   : > { %6921 = vmatprep.mubr.bf16.mxu1 %v8677_v6 }
 0x15e   : > { %7018 = vmatmul.mubr.bf16.gmra.mrb[60].mxu0 %v7824_v19 }
 0x15f   : > { %6922 = vmatmul.mubr.bf16.gmra.mrb[28].mxu1 %v8685_v13  ;;  %7037 = vmatprep.mubr.bf16.mxu0 %v8505_v55  ;;  %v7756_v55 = vld [vmem:[%s9683_s1 + $0x390] sm:$0xff]  }
 0x160   : > { %6941 = vmatprep.mubr.bf16.mxu1 %v8523_v25 }
 0x166   : > { %7038 = vmatmul.mubr.bf16.vlgmr.msra.gmra.mrb[32].mxu0 %v8523_v25  ;;  %v7755_v25 = vld [vmem:[%s9683_s1 + $0x310] sm:$0xff]  }
 0x167   : > { %6942 = vmatmul.mubr.bf16.vlgmr.msra.gmra.mrb[0].mxu1 %v8533_v61  ;;  %7166 = vmatpush3.bf16.msra.mxu0 %v7752_v56  ;;  %v7797_v56 = vld [vmem:[%s7893_s10 + $0x60] sm:$0xff] }
 0x168   : > { %7070 = vmatpush3.bf16.msra.mxu1 %v7751_v47  ;;  %6945 = vmatprep.mubr.bf16.mxu1 %v8559_v38  ;;  %v3804_v47 = vrot.slane %v8591_v37, 1  ;;  %v7773_v37 = vld [vmem:[%s9683_s1 + $0x358] sm:$0xff]  }
 0x169   : > { %7041 = vmatprep.mubr.bf16.mxu0 %v8533_v61  ;;  %7071 = vmatprep.subr.bf16.mxu1 %v7753_v22  ;;  %v7758_v61 = vld [vmem:[%s9683_s1 + $0x398] sm:$0xff]  }
 0x16a   : > { %7167 = vmatprep.subr.bf16.mxu0 %v7754_v27 }
 0x16b   : > { %7168 = vmatpush3.bf16.msra.mxu0 %v7754_v27 }
 0x16c   : > { %7072 = vmatpush3.bf16.msra.mxu1 %v7753_v22  ;;  %7169 = vmatprep.subr.bf16.mxu0 %v7756_v55  ;;  %v3806_v22 = vrot.slane %v7797_v56, 1 }
 0x16d   : > { %7073 = vmatprep.subr.bf16.mxu1 %v7755_v25 }
 0x16e   : > { %7042 = vmatmul.mubr.bf16.gmra.mrb[36].mxu0 %v8559_v38  ;;  %v7760_v38 = vld [vmem:[%s9683_s1 + $0x3a0] sm:$0xff]  }
 0x16f   : > { %6946 = vmatmul.mubr.bf16.gmra.mrb[4].mxu1 %v8569_v8  ;;  %7045 = vmatprep.mubr.bf16.mxu0 %v8569_v8  ;;  %v7761_v8 = vld [vmem:[%s9683_s1 + $0x328] sm:$0xff]  }
 0x170   : > { %6949 = vmatprep.mubr.bf16.mxu1 %v8595_v39  ;;  %7074 = vmatpush3.bf16.msra.mxu1 %v7755_v25  ;;  %v7798_v25 = vld [vmem:[%s7893_s10 + $0x68] sm:$0xff] }
 0x171   : > { %7170 = vmatpush3.bf16.msra.mxu0 %v7756_v55  ;;  %7075 = vmatprep.subr.bf16.mxu1 %v7757_v40  ;;  %v318_v55 = vand.u32 15, %v216_v32 }
 0x172   : > { %7171 = vmatprep.subr.bf16.mxu0 %v7758_v61 }
 0x173   : > { %vm664_vm8 = vcmp.le.s32.totalorder %v318_v55, 14 }
 0x174   : > { %7076 = vmatpush3.bf16.msra.mxu1 %v7757_v40  ;;  %v3808_v40 = vrot.slane %v7798_v25, 1  ;;  %vm9066_vm12 = vmpackc.low %vm664_vm8, %vm9756_vm10  ;;  %v7803_v25 = vld [vmem:[%s7893_s10 + $0xa0] sm:$0xff] }
 0x175   : > { %7172 = vmatpush3.bf16.msra.mxu0 %v7758_v61  ;;  %7077 = vmatprep.subr.bf16.mxu1 %v7759_v51  ;;  %v3810_v61 = vrot.slane %v8618_v52, 1  ;;  %v3805_v52 = vsel %vm9703_vm1, %v3802_v46, %v3804_v47 }
 0x176   : > { %7046 = vmatmul.mubr.bf16.gmra.mrb[40].mxu0 %v8595_v39  ;;  %7173 = vmatprep.subr.bf16.mxu0 %v7760_v38  ;;  %v7764_v39 = vld [vmem:[%s9683_s1 + $0x3b0] sm:$0xff]  }
 0x177   : > { %6950 = vmatmul.mubr.bf16.gmra.mrb[8].mxu1 %v8599_v45  ;;  %7049 = vmatprep.mubr.bf16.mxu0 %v8599_v45  ;;  %v7765_v45 = vld [vmem:[%s9683_s1 + $0x338] sm:$0xff]  }
 0x178   : > { %6953 = vmatprep.mubr.bf16.mxu1 %v8625_v62  ;;  %7078 = vmatpush3.bf16.msra.mxu1 %v7759_v51  ;;  %v332_v51 = vand.u32 15, %v218_v44 }
 0x179   : > { %7174 = vmatpush3.bf16.msra.mxu0 %v7760_v38  ;;  %7079 = vmatprep.subr.bf16.mxu1 %v7761_v8  ;;  %v7774_v38 = vld [vmem:[%s9683_s1 + $0x3d8] sm:$0xff]  }
 0x17a   : > { %7175 = vmatprep.subr.bf16.mxu0 %v7762_v0  ;;  %vm666_vm9 = vcmp.le.s32.totalorder %v332_v51, 14 }
 0x17b   : > { %vm9080_vm0 = vmpackc.low %vm666_vm9, %vm9756_vm10 }
 0x17c   : > { %7080 = vmatpush3.bf16.msra.mxu1 %v7761_v8  ;;  %v3807_v8 = vsel %vm9703_vm1, %v3804_v47, %v3806_v22  ;;  %v9788_v47 = vmov 0 }
 0x17d   : > { %7176 = vmatpush3.bf16.msra.mxu0 %v7762_v0  ;;  %7081 = vmatprep.subr.bf16.mxu1 %v7763_v3  ;;  %v3809_v0 = vsel %vm9703_vm1, %v3806_v22, %v3808_v40  ;;  %v7802_v22 = vld [vmem:[%s7893_s10 + $0x98] sm:$0xff] }
 0x17e   : > { %7050 = vmatmul.mubr.bf16.gmra.mrb[44].mxu0 %v8625_v62  ;;  %7177 = vmatprep.subr.bf16.mxu0 %v7764_v39  ;;  %v7768_v62 = vld [vmem:[%s9683_s1 + $0x3c0] sm:$0xff]   ;;  %v3820_v55 = vrot.slane %v7802_v22, 1 }
 0x17f   : > { %6954 = vmatmul.mubr.bf16.gmra.mrb[12].mxu1 %v8629_v31  ;;  %7053 = vmatprep.mubr.bf16.mxu0 %v8629_v31  ;;  %v206_v31 = vadd.s32 8, %v7871_v7 }
 0x180   : > { %6957 = vmatprep.mubr.bf16.mxu1 %v8649_v36  ;;  %7082 = vmatpush3.bf16.msra.mxu1 %v7763_v3  ;;  %v3811_v3 = vsel %vm9703_vm1, %v3808_v40, %v3810_v61  ;;  %v3822_v40 = vrot.slane %v7803_v25, 1 }
 0x181   : > { %7178 = vmatpush3.bf16.msra.mxu0 %v7764_v39  ;;  %7083 = vmatprep.subr.bf16.mxu1 %v7765_v45  ;;  %v248_v29 = vand.u32 15, %v206_v31  ;;  %v220_v39 = vadd.s32 120, %v7871_v7  ;;  %v7776_v31 = vld [vmem:[%s9683_s1 + $0x3e0] sm:$0xff]  }
 0x182   : > { %7179 = vmatprep.subr.bf16.mxu0 %v7766_v9 }
 0x183   : > { %vm654_vm13 = vcmp.le.s32.totalorder %v248_v29, 14  ;;  %v9075_v29 = vpack.c.bf16 %v3811_v3, %v3809_v0  ;;  %v7805_v0 = vld [vmem:[%s7893_s10 + $0xb0] sm:$0xff] }
 0x184   : > { %7084 = vmatpush3.bf16.msra.mxu1 %v7765_v45  ;;  %vm8950_vm2 = vmpackc.low %vm654_vm13, %vm9756_vm10  ;;  %v222_v45 = vadd.s32 136, %v7871_v7  ;;  %v3826_v3 = vrot.slane %v7805_v0, 1 }
 0x185   : > { %7180 = vmatpush3.bf16.msra.mxu0 %v7766_v9  ;;  %7117 = vmatprep.subr.bf16.mxu1 %v7767_v24  ;;  %v7775_v9 = vld [vmem:[%s9683_s1 + $0x360] sm:$0xff]  }
 0x186   : > { %7054 = vmatmul.mubr.bf16.gmra.mrb[48].mxu0 %v8649_v36  ;;  %7213 = vmatprep.subr.bf16.mxu0 %v7768_v62  ;;  %v3784_v36 = vrot.slane %v8501_v54, 1  ;;  %v210_v54 = vadd.s32 40, %v7871_v7  ;;  %v360_v11 = vand.u32 15, %v222_v45  ;;  %v388_v45 = vand.u32 15, %v226_v5 }
 0x187   : > { %6958 = vmatmul.mubr.bf16.gmra.mrb[16].mxu1 %v8653_v63  ;;  %7057 = vmatprep.mubr.bf16.mxu0 %v8653_v63 }
 0x188   : > { %6961 = vmatprep.mubr.bf16.mxu1 %v8661_v49  ;;  %v3785_v63 = vsel %vm9703_vm1, %v3783_v28, %v3784_v36  ;;  %v276_v1 = vand.u32 15, %v210_v54  ;;  %vm9197_vm8 = vcmp.le.s32.totalorder %v388_v45, 14 }
 0x18a   : > { %vm658_vm7 = vcmp.le.s32.totalorder %v276_v1, 14  ;;  %v9086_v1 = vld [vmem:[%s7893_s10 + $0x90] sm:$0xff] }
 0x18b   : > { %vm8986_vm14 = vmpackc.low %vm658_vm7, %vm9756_vm10 }
 0x18e   : > { %7058 = vmatmul.mubr.bf16.gmra.mrb[52].mxu0 %v8661_v49  ;;  %v3787_v49 = vsel %vm9703_vm1, %v3784_v36, %v3786_v10  ;;  %v212_v10 = vadd.s32 56, %v7871_v7  ;;  %v9073_v36 = vld [vmem:[%s9684_s2] sm:$0xf] }
 0x18f   : > { %6962 = vmatmul.mubr.bf16.gmra.mrb[20].mxu1 %v8665_v50  ;;  %7061 = vmatprep.mubr.bf16.mxu0 %v8665_v50  ;;  %v208_v50 = vadd.s32 24, %v7871_v7  ;;  %v8946_v53 = vpack.c.bf16 %v3787_v49, %v3785_v63  ;;  %v3812_v63 = vrot.slane %v8621_v59, 1  ;;  %v7799_v49 = vld [vmem:[%s7893_s10 + $0x80] sm:$0xff]  ;;  %v7777_v59 = vld [vmem:[%s9683_s1 + $0x368] sm:$0xff]  }
 0x190   : > { %6965 = vmatprep.mubr.bf16.mxu1 %v8673_v2  ;;  %v290_v20 = vand.u32 15, %v212_v10  ;;  %v3818_v10 = vrot.slane %v9086_v1, 1 }
 0x191   : > { %v3813_v23 = vsel %vm9703_vm1, %v3810_v61, %v3812_v63 }
 0x192   : > { %vm660_vm15 = vcmp.le.s32.totalorder %v290_v20, 14  ;;  %v3819_v46 = vsel %vm9703_vm1, %v3816_v57, %v3818_v10  ;;  %v9796_v20 = vmov 0 }
 0x193   : > { %vm9017_vm4 = vmpackc.low %vm660_vm15, %vm9756_vm10 }
 0x196   : > { %7062 = vmatmul.mubr.bf16.gmra.mrb[56].mxu0 %v8673_v2 }
 0x197   : > { %6966 = vmatmul.mubr.bf16.gmra.mrb[24].mxu1 %v8677_v6  ;;  %7065 = vmatprep.mubr.bf16.mxu0 %v8677_v6  ;;  %v262_v6 = vand.u32 15, %v208_v50  ;;  %v3814_v50 = vrot.slane %v7799_v49, 1 }
 0x198   : > { %6969 = vmatprep.mubr.bf16.mxu1 %v8685_v13 }
 0x199   : > { %vm656_vm11 = vcmp.le.s32.totalorder %v262_v6, 14  ;;  %v346_v6 = vand.u32 15, %v220_v39  ;;  %v3815_v12 = vsel %vm9703_vm1, %v3812_v63, %v3814_v50  ;;  %v3817_v21 = vsel %vm9703_vm1, %v3814_v50, %v3816_v57 }
 0x19a   : > { %vm8969_vm6 = vmpackc.low %vm656_vm11, %vm9756_vm10  ;;  %vm9127_vm11 = vcmp.le.s32.totalorder %v360_v11, 14  ;;  %v9136_v32 = vpack.c.bf16 %v3815_v12, %v3813_v23  ;;  %v9149_v56 = vpack.c.bf16 %v3819_v46, %v3817_v21  ;;  %v3823_v63 = vsel %vm9703_vm1, %v3820_v55, %v3822_v40  ;;  %v7806_v46 = vld [vmem:[%s7893_s10 + $0xb8] sm:$0xff] }
 0x19b   : > { %vm9113_vm13 = vcmp.le.s32.totalorder %v346_v6, 14  ;;  %vm9158_vm15 = vmpackc.low %vm9127_vm11, %vm9756_vm10 }
 0x19c   : > { %vm9145_vm7 = vmpackc.low %vm9113_vm13, %vm9756_vm10 }
 0x19d   : > { %v9789_v47 = vsel %vm9145_vm7, 4294967295, %v9788_v47  ;;  %vm9222_vm13 = vmpackc.low %vm9197_vm8, %vm9756_vm10 }
 0x19e   : > { %7066 = vmatmul.mubr.bf16.gmra.mrb[60].mxu0 %v8685_v13 }
 0x19f   : > { %6970 = vmatmul.mubr.bf16.gmra.mrb[28].mxu1 %v7824_v19  ;;  %7181 = vmatprep.mubr.msk.bf16.mxu0 %vm8950_vm2, %v8946_v53 }
 0x1a0   : > { %7085 = vmatprep.mubr.bf16.mxu1 %v7824_v19 }
 0x1a6   : > { %7182 = vmatmul.mubr.msk.bf16.vlgmr.msra.gmra.mrb[32].mxu0 %vm8969_vm6, %v8783_v15 }
 0x1a7   : > { %7086 = vmatmul.mubr.msk.bf16.vlgmr.msra.gmra.mrb[32].mxu1 %vm8950_vm2, %v8946_v53  ;;  %7214 = vmatpush3.bf16.msra.mxu0 %v7768_v62  ;;  %v5027_v62 = vsub.s32 0, %v7871_v7 }
 0x1a8   : > { %7118 = vmatpush3.bf16.msra.mxu1 %v7767_v24  ;;  %7089 = vmatprep.mubr.msk.bf16.mxu1 %vm8969_vm6, %v8783_v15  ;;  %v9059_v24 = vpack.c.bf16 %v3807_v8, %v3805_v52  ;;  %v7804_v52 = vld [vmem:[%s7893_s10 + $0xa8] sm:$0xff] }
 0x1a9   : > { %7185 = vmatprep.mubr.msk.bf16.mxu0 %vm8986_vm14, %v8977_v30  ;;  %7119 = vmatprep.subr.bf16.mxu1 %v7769_v4  ;;  %v9097_v33 = vrot.slane %v9073_v36, %v5027_v62  ;;  %v3824_v8 = vrot.slane %v7804_v52, 1  ;;  %v7782_v62 = vld [vmem:[%s9683_s1 + $0x3f8] sm:$0xff]   ;;  %v232_v52 = vadd.s32 216, %v7871_v7 }
 0x1aa   : > { %7215 = vmatprep.subr.bf16.mxu0 %v7770_v60 }
 0x1ab   : > { %7216 = vmatpush3.bf16.msra.mxu0 %v7770_v60  ;;  %v3825_v50 = vsel %vm9703_vm1, %v3822_v40, %v3824_v8  ;;  %v3827_v6 = vsel %vm9703_vm1, %v3824_v8, %v3826_v3 }
 0x1ac   : > { %7120 = vmatpush3.bf16.msra.mxu1 %v7769_v4  ;;  %7217 = vmatprep.subr.bf16.mxu0 %v7772_v35  ;;  %v224_v4 = vadd.s32 152, %v7871_v7  ;;  %v9213_v21 = vpack.c.bf16 %v3827_v6, %v3825_v50  ;;  %v7810_v50 = vld [vmem:[%s7893_s10 + $0xd8] sm:$0xff] }
 0x1ad   : > { %7121 = vmatprep.subr.bf16.mxu1 %v7771_v43  ;;  %v3836_v6 = vrot.slane %v7810_v50, 1 }
 0x1ae   : > { %7186 = vmatmul.mubr.msk.bf16.gmra.mrb[36].mxu0 %vm9017_vm4, %v9014_v14 }
 0x1af   : > { %7090 = vmatmul.mubr.msk.bf16.gmra.mrb[36].mxu1 %vm8986_vm14, %v8977_v30  ;;  %7189 = vmatprep.mubr.msk.bf16.mxu0 %vm9026_vm5, %v9021_v42 }
 0x1b0   : > { %7093 = vmatprep.mubr.msk.bf16.mxu1 %vm9017_vm4, %v9014_v14  ;;  %7122 = vmatpush3.bf16.msra.mxu1 %v7771_v43 }
 0x1b1   : > { %7218 = vmatpush3.bf16.msra.mxu0 %v7772_v35  ;;  %7123 = vmatprep.subr.bf16.mxu1 %v7773_v37  ;;  %v7780_v35 = vld [vmem:[%s9683_s1 + $0x3f0] sm:$0xff]  }
 0x1b2   : > { %7219 = vmatprep.subr.bf16.mxu0 %v7774_v38 }
 0x1b4   : > { %7124 = vmatpush3.bf16.msra.mxu1 %v7773_v37  ;;  %v9790_v37 = vmov 0 }
 0x1b5   : > { %7220 = vmatpush3.bf16.msra.mxu0 %v7774_v38  ;;  %7125 = vmatprep.subr.bf16.mxu1 %v7775_v9  ;;  %v9791_v37 = vsel %vm9158_vm15, 4294967295, %v9790_v37  ;;  %v374_v38 = vand.u32 15, %v224_v4  ;;  %v3828_v4 = vrot.slane %v7806_v46, 1  ;;  %v7813_v46 = vld [vmem:[%s7893_s10 + $0xf0] sm:$0xff] }
 0x1b6   : > { %7190 = vmatmul.mubr.msk.bf16.gmra.mrb[40].mxu0 %vm9066_vm12, %v9059_v24  ;;  %7221 = vmatprep.subr.bf16.mxu0 %v7776_v31 }
 0x1b7   : > { %7094 = vmatmul.mubr.msk.bf16.gmra.mrb[40].mxu1 %vm9026_vm5, %v9021_v42  ;;  %7193 = vmatprep.mubr.msk.bf16.mxu0 %vm9080_vm0, %v9075_v29  ;;  %vm9190_vm3 = vcmp.le.s32.totalorder %v374_v38, 14  ;;  %v3829_v40 = vsel %vm9703_vm1, %v3826_v3, %v3828_v4  ;;  %v234_v3 = vadd.s32 232, %v7871_v7 }
 0x1b8   : > { %7097 = vmatprep.mubr.msk.bf16.mxu1 %vm9066_vm12, %v9059_v24  ;;  %7126 = vmatpush3.bf16.msra.mxu1 %v7775_v9  ;;  %v7781_v9 = vld [vmem:[%s9683_s1 + $0x378] sm:$0xff]   ;;  %vm9209_vm9 = vmpackc.low %vm9190_vm3, %vm9756_vm10 }
 0x1b9   : > { %v6751_v48 = vpop.f32.mrb[0].mxu0  ;;  %7222 = vmatpush3.bf16.msra.mxu0 %v7776_v31  ;;  %7127 = vmatprep.subr.bf16.mxu1 %v7777_v59  ;;  %v3821_v31 = vsel %vm9703_vm1, %v3818_v10, %v3820_v55  ;;  %v230_v10 = vadd.s32 200, %v7871_v7  ;;  %v9797_v20 = vsel %vm9209_vm9, 4294967295, %v9796_v20 }
 0x1ba   : > { %v5053_v16 = vadd.f32 %v6751_v48, %v9097_v33  ;;  %v2220_v17 = vpop.f32.mrb[1].mxu0  ;;  %7223 = vmatprep.subr.bf16.mxu0 %v7778_v18  ;;  %v7807_v48 = vld [vmem:[%s7893_s10 + $0xc0] sm:$0xff] }
 0x1bb   : > { %v5045_v43 = vadd.f32 %v9097_v33, %v2220_v17  ;;  %v6752_v44 = vpop.f32.mrb[2].mxu0  ;;  %v3830_v60 = vrot.slane %v7807_v48, 1  ;;  %v402_v17 = vand.u32 15, %v228_v34  ;;  %v416_v25 = vand.u32 15, %v230_v10  ;;  %v7811_v34 = vld [vmem:[%s7893_s10 + $0xe0] sm:$0xff] }
 0x1bc   : > { %5181 = vst [vmem:[%s9125_s29 + $0x40] sm:$0xff] %v5053_v16  ;;  %v5057_v61 = vadd.f32 %v6752_v44, %v9097_v33  ;;  %v2223_v51 = vpop.f32.mrb[3].mxu0  ;;  %7128 = vmatpush3.bf16.msra.mxu1 %v7777_v59  ;;  %v9798_v16 = vmov 0  ;;  %v7809_v44 = vld [vmem:[%s7893_s10 + $0xd0] sm:$0xff] }
 0x1bd   : > { %5173 = vst [vmem:[%s9125_s29] sm:$0xff] %v5045_v43  ;;  %v5049_v39 = vadd.f32 %v9097_v33, %v2223_v51  ;;  %7224 = vmatpush3.bf16.msra.mxu0 %v7778_v18  ;;  %7129 = vmatprep.subr.bf16.mxu1 %v7779_v26  ;;  %v9203_v18 = vpack.c.bf16 %v3823_v63, %v3821_v31  ;;  %v9799_v16 = vsel %vm9222_vm13, 4294967295, %v9798_v16  ;;  %v3834_v22 = vrot.slane %v7809_v44, 1 }
 0x1be   : > { %5185 = vst [vmem:[%s9125_s29 + $0x60] sm:$0xff] %v5057_v61  ;;  %7194 = vmatmul.mubr.msk.bf16.gmra.mrb[44].mxu0 %vm9145_vm7, %v9136_v32  ;;  %7225 = vmatprep.subr.bf16.mxu0 %v7780_v35  ;;  %v3831_v61 = vsel %vm9703_vm1, %v3828_v4, %v3830_v60  ;;  %vm676_vm11 = vcmp.le.s32.totalorder %v402_v17, 14  ;;  %vm9249_vm3 = vcmp.le.s32.totalorder %v416_v25, 14  ;;  %v3842_v4 = vrot.slane %v7813_v46, 1 }
 0x1bf   : > { %5177 = vst [vmem:[%s9125_s29 + $0x20] sm:$0xff] %v5049_v39  ;;  %7098 = vmatmul.mubr.msk.bf16.gmra.mrb[44].mxu1 %vm9080_vm0, %v9075_v29  ;;  %7197 = vmatprep.mubr.msk.bf16.mxu0 %vm9158_vm15, %v9149_v56  ;;  %vm9259_vm8 = vmpackc.low %vm676_vm11, %vm9756_vm10  ;;  %vm9806_vm11 = vcmask 1046528  }
 0x1c0   : > { %7101 = vmatprep.mubr.msk.bf16.mxu1 %vm9145_vm7, %v9136_v32  ;;  %7130 = vmatpush3.bf16.msra.mxu1 %v7779_v26 }
 0x1c1   : > { %v6755_v57 = vpop.f32.mrb[4].mxu0  ;;  %7226 = vmatpush3.bf16.msra.mxu0 %v7780_v35  ;;  %7131 = vmatprep.subr.bf16.mxu1 %v7781_v9  ;;  %v7808_v35 = vld [vmem:[%s7893_s10 + $0xc8] sm:$0xff] }
 0x1c2   : > { %v5069_v11 = vadd.f32 %v6755_v57, %v9097_v33  ;;  %v2236_v59 = vpop.f32.mrb[5].mxu0  ;;  %7227 = vmatprep.subr.bf16.mxu0 %v7782_v62  ;;  %v3832_v43 = vrot.slane %v7808_v35, 1  ;;  %v3838_v57 = vrot.slane %v7811_v34, 1 }
 0x1c3   : > { %v5061_v23 = vadd.f32 %v9097_v33, %v2236_v59  ;;  %v6756_v12 = vpop.f32.mrb[6].mxu0  ;;  %v430_v59 = vand.u32 15, %v232_v52  ;;  %v7814_v52 = vld [vmem:[%s7893_s10 + $0xf8] sm:$0xff] }
 0x1c4   : > { %5197 = vst [vmem:[%s9125_s29 + $0xc0] sm:$0xff] %v5069_v11  ;;  %v5073_v5 = vadd.f32 %v6756_v12, %v9097_v33  ;;  %v2239_v26 = vpop.f32.mrb[7].mxu0  ;;  %7132 = vmatpush3.bf16.msra.mxu1 %v7781_v9  ;;  %v3833_v51 = vsel %vm9703_vm1, %v3830_v60, %v3832_v43  ;;  %v3835_v38 = vsel %vm9703_vm1, %v3832_v43, %v3834_v22  ;;  %vm9272_vm1 = vmpackc.low %vm9249_vm3, %vm9756_vm10  ;;  %v444_v60 = vand.u32 15, %v234_v3 }
 0x1c5   : > { %5189 = vst [vmem:[%s9125_s29 + $0x80] sm:$0xff] %v5061_v23  ;;  %v5065_v55 = vadd.f32 %v9097_v33, %v2239_v26  ;;  %7228 = vmatpush3.bf16.msra.mxu0 %v7782_v62  ;;  %v9255_v9 = vpack.c.bf16 %v3831_v61, %v3829_v40  ;;  %v9263_v49 = vpack.c.bf16 %v3835_v38, %v3833_v51  ;;  %v7812_v23 = vld [vmem:[%s7893_s10 + $0xe8] sm:$0xff]  ;;  %vm9807_vm3 = vmmov %vm9806_vm11  ;;  %v236_v43 = vadd.s32 248, %v7871_v7 }
 0x1c6   : > { %5201 = vst [vmem:[%s9125_s29 + $0xe0] sm:$0xff] %v5073_v5  ;;  %7198 = vmatmul.mubr.msk.bf16.gmra.mrb[48].mxu0 %vm9209_vm9, %v9203_v18  ;;  %v3840_v12 = vrot.slane %v7812_v23, 1  ;;  %v3837_v5 = vsel %vm9806_vm11, %v3834_v22, %v3836_v6  ;;  %v3839_v26 = vsel %vm9807_vm3, %v3836_v6, %v3838_v57  ;;  %vm9809_vm7 = vmmov %vm9807_vm3 }
 0x1c7   : > { %5193 = vst [vmem:[%s9125_s29 + $0xa0] sm:$0xff] %v5065_v55  ;;  %7102 = vmatmul.mubr.msk.bf16.gmra.mrb[48].mxu1 %vm9158_vm15, %v9149_v56  ;;  %7201 = vmatprep.mubr.msk.bf16.mxu0 %vm9222_vm13, %v9213_v21  ;;  %vm9808_vm15 = vmmov %vm9807_vm3  ;;  %v9300_v25 = vpack.c.bf16 %v3839_v26, %v3837_v5 }
 0x1c8   : > { %7105 = vmatprep.mubr.msk.bf16.mxu1 %vm9209_vm9, %v9203_v18  ;;  %vm680_vm9 = vcmp.le.s32.totalorder %v430_v59, 14  ;;  %v3841_v17 = vsel %vm9808_vm15, %v3838_v57, %v3840_v12  ;;  %v3843_v35 = vsel %vm9809_vm7, %v3840_v12, %v3842_v4  ;;  %vm9814_vm15 = vmmov %vm9807_vm3 }
 0x1c9   : > { %v6759_v8 = vpop.f32.mrb[8].mxu0  ;;  %vm9304_vm11 = vmpackc.low %vm680_vm9, %vm9756_vm10  ;;  %v9308_v38 = vpack.c.bf16 %v3843_v35, %v3841_v17 }
 0x1ca   : > { %v5085_v39 = vadd.f32 %v6759_v8, %v9097_v33  ;;  %v2252_v45 = vpop.f32.mrb[9].mxu0  ;;  %v3844_v8 = vrot.slane %v7814_v52, 1  ;;  %vm9815_vm9 = vmmov %vm9807_vm3 }
 0x1cb   : > { %v5077_v62 = vadd.f32 %v9097_v33, %v2252_v45  ;;  %v6760_v31 = vpop.f32.mrb[10].mxu0  ;;  %v458_v45 = vand.u32 15, %v236_v43 }
 0x1cc   : > { %5213 = vst [vmem:[%s9125_s29 + $0x140] sm:$0xff] %v5085_v39  ;;  %v5089_v1 = vadd.f32 %v6760_v31, %v9097_v33  ;;  %v2255_v10 = vpop.f32.mrb[11].mxu0  ;;  %v3845_v31 = vsel %vm9814_vm15, %v3842_v4, %v3844_v8  ;;  %v3878_v50 = vsel %vm9815_vm9, %v3844_v8, 0.0 }
 0x1cd   : > { %5205 = vst [vmem:[%s9125_s29 + $0x100] sm:$0xff] %v5077_v62  ;;  %v5081_v48 = vadd.f32 %v9097_v33, %v2255_v10 }
 0x1ce   : > { %5217 = vst [vmem:[%s9125_s29 + $0x160] sm:$0xff] %v5089_v1  ;;  %7202 = vmatmul.mubr.msk.bf16.gmra.mrb[52].mxu0 %vm9259_vm8, %v9255_v9  ;;  %v9337_v1 = vpack.c.bf16 %v3878_v50, %v3845_v31 }
 0x1cf   : > { %5209 = vst [vmem:[%s9125_s29 + $0x120] sm:$0xff] %v5081_v48  ;;  %7106 = vmatmul.mubr.msk.bf16.gmra.mrb[52].mxu1 %vm9222_vm13, %v9213_v21  ;;  %7205 = vmatprep.mubr.msk.bf16.mxu0 %vm9272_vm1, %v9263_v49  ;;  %vm682_vm13 = vcmp.le.s32.totalorder %v444_v60, 14 }
 0x1d0   : > { %7109 = vmatprep.mubr.msk.bf16.mxu1 %vm9259_vm8, %v9255_v9  ;;  %vm9314_vm7 = vmpackc.low %vm682_vm13, %vm9756_vm10  ;;  %vm684_vm13 = vcmp.le.s32.totalorder %v458_v45, 14 }
 0x1d1   : > { %v6763_v44 = vpop.f32.mrb[12].mxu0  ;;  %vm9341_vm3 = vmpackc.low %vm684_vm13, %vm9756_vm10  ;;  %vm9818_vm10 = vnez %v9789_v47 }
 0x1d2   : > { %v5101_v22 = vadd.f32 %v6763_v44, %v9097_v33  ;;  %v2268_v55 = vpop.f32.mrb[13].mxu0 }
 0x1d3   : > { %v5093_v40 = vadd.f32 %v9097_v33, %v2268_v55  ;;  %v6764_v61 = vpop.f32.mrb[14].mxu0 }
 0x1d4   : > { %5229 = vst [vmem:[%s9125_s29 + $0x1c0] sm:$0xff] %v5101_v22  ;;  %v5105_v0 = vadd.f32 %v6764_v61, %v9097_v33  ;;  %v2271_v3 = vpop.f32.mrb[15].mxu0 }
 0x1d5   : > { %5221 = vst [vmem:[%s9125_s29 + $0x180] sm:$0xff] %v5093_v40  ;;  %v5097_v62 = vadd.f32 %v9097_v33, %v2271_v3 }
 0x1d6   : > { %5233 = vst [vmem:[%s9125_s29 + $0x1e0] sm:$0xff] %v5105_v0  ;;  %7206 = vmatmul.mubr.msk.bf16.gmra.mrb[56].mxu0 %vm9304_vm11, %v9300_v25 }
 0x1d7   : > { %5225 = vst [vmem:[%s9125_s29 + $0x1a0] sm:$0xff] %v5097_v62  ;;  %7110 = vmatmul.mubr.msk.bf16.gmra.mrb[56].mxu1 %vm9272_vm1, %v9263_v49  ;;  %7209 = vmatprep.mubr.msk.bf16.mxu0 %vm9314_vm7, %v9308_v38 }
 0x1d8   : > { %7113 = vmatprep.mubr.msk.bf16.mxu1 %vm9304_vm11, %v9300_v25 }
 0x1d9   : > { %v6767_v6 = vpop.f32.mrb[16].mxu0 }
 0x1da   : > { %v5117_v34 = vadd.f32 %v6767_v6, %v9097_v33  ;;  %v2284_v57 = vpop.f32.mrb[17].mxu0 }
 0x1db   : > { %v5109_v10 = vadd.f32 %v9097_v33, %v2284_v57  ;;  %v6768_v59 = vpop.f32.mrb[18].mxu0 }
 0x1dc   : > { %5245 = vst [vmem:[%s9125_s29 + $0x240] sm:$0xff] %v5117_v34  ;;  %v5121_v12 = vadd.f32 %v6768_v59, %v9097_v33  ;;  %v2287_v46 = vpop.f32.mrb[19].mxu0 }
 0x1dd   : > { %5237 = vst [vmem:[%s9125_s29 + $0x200] sm:$0xff] %v5109_v10  ;;  %v5113_v4 = vadd.f32 %v9097_v33, %v2287_v46 }
 0x1de   : > { %5249 = vst [vmem:[%s9125_s29 + $0x260] sm:$0xff] %v5121_v12  ;;  %7210 = vmatmul.mubr.msk.bf16.gmra.mrb[60].mxu0 %vm9341_vm3, %v9337_v1 }
 0x1df   : > { %5241 = vst [vmem:[%s9125_s29 + $0x220] sm:$0xff] %v5113_v4  ;;  %7114 = vmatmul.mubr.msk.bf16.gmra.mrb[60].mxu1 %vm9314_vm7, %v9308_v38  ;;  %7229 = vmatprep.mubr.msk.bf16.mxu0 %vm8969_vm6, %v8783_v15 }
 0x1e0   : > { %7133 = vmatprep.mubr.msk.bf16.mxu1 %vm8950_vm2, %v8946_v53  ;;  %vm9819_vm2 = vnez %v9791_v37 }
 0x1e1   : > { %v6771_v48 = vpop.f32.mrb[20].mxu0 }
 0x1e2   : > { %v5133_v60 = vadd.f32 %v6771_v48, %v9097_v33  ;;  %v2300_v5 = vpop.f32.mrb[21].mxu0 }
 0x1e3   : > { %v5125_v26 = vadd.f32 %v9097_v33, %v2300_v5  ;;  %v6772_v17 = vpop.f32.mrb[22].mxu0 }
 0x1e4   : > { %5261 = vst [vmem:[%s9125_s29 + $0x2c0] sm:$0xff] %v5133_v60  ;;  %v5137_v35 = vadd.f32 %v6772_v17, %v9097_v33  ;;  %v2303_v43 = vpop.f32.mrb[23].mxu0 }
 0x1e5   : > { %5253 = vst [vmem:[%s9125_s29 + $0x280] sm:$0xff] %v5125_v26  ;;  %v5129_v44 = vadd.f32 %v9097_v33, %v2303_v43 }
 0x1e6   : > { %5265 = vst [vmem:[%s9125_s29 + $0x2e0] sm:$0xff] %v5137_v35  ;;  %7230 = vmatmul.mubr.msk.bf16.vlgmr.msra.gmra.mrb[32].mxu0 %vm8986_vm14, %v8977_v30 }
 0x1e7   : > { %5257 = vst [vmem:[%s9125_s29 + $0x2a0] sm:$0xff] %v5129_v44  ;;  %7134 = vmatmul.mubr.msk.bf16.vlgmr.msra.gmra.mrb[32].mxu1 %vm8969_vm6, %v8783_v15  ;;  %7233 = vmatprep.mubr.msk.bf16.mxu0 %vm9017_vm4, %v9014_v14  ;;  %vm9820_vm6 = vnez %v9797_v20 }
 0x1e8   : > { %7137 = vmatprep.mubr.msk.bf16.mxu1 %vm8986_vm14, %v8977_v30  ;;  %vm9821_vm14 = vnez %v9799_v16 }
 0x1e9   : > { %v6775_v53 = vpop.f32.mrb[24].mxu0 }
 0x1ea   : > { %v5149_v2 = vadd.f32 %v6775_v53, %v9097_v33  ;;  %v2316_v22 = vpop.f32.mrb[25].mxu0 }
 0x1eb   : > { %v5141_v55 = vadd.f32 %v9097_v33, %v2316_v22  ;;  %v6776_v40 = vpop.f32.mrb[26].mxu0 }
 0x1ec   : > { %5277 = vst [vmem:[%s9125_s29 + $0x340] sm:$0xff] %v5149_v2  ;;  %v5153_v13 = vadd.f32 %v6776_v40, %v9097_v33  ;;  %v2319_v15 = vpop.f32.mrb[27].mxu0 }
 0x1ed   : > { %5269 = vst [vmem:[%s9125_s29 + $0x300] sm:$0xff] %v5141_v55  ;;  %v5145_v61 = vadd.f32 %v9097_v33, %v2319_v15 }
 0x1ee   : > { %5281 = vst [vmem:[%s9125_s29 + $0x360] sm:$0xff] %v5153_v13  ;;  %7234 = vmatmul.mubr.msk.bf16.gmra.mrb[36].mxu0 %vm9026_vm5, %v9021_v42 }
 0x1ef   : > { %5273 = vst [vmem:[%s9125_s29 + $0x320] sm:$0xff] %v5145_v61  ;;  %7138 = vmatmul.mubr.msk.bf16.gmra.mrb[36].mxu1 %vm9017_vm4, %v9014_v14  ;;  %7237 = vmatprep.mubr.msk.bf16.mxu0 %vm9066_vm12, %v9059_v24 }
 0x1f0   : > { %7141 = vmatprep.mubr.msk.bf16.mxu1 %vm9026_vm5, %v9021_v42  ;;  %v5035_v42 = vsub.s32 2, %v7871_v7 }
 0x1f1   : > { %v6779_v30 = vpop.f32.mrb[28].mxu0 }
 0x1f2   : > { %v5165_v58 = vadd.f32 %v6779_v30, %v9097_v33  ;;  %v2332_v52 = vpop.f32.mrb[29].mxu0  ;;  %v9477_v27 = vrot.slane %v9073_v36, %v5035_v42 }
 0x1f3   : > { %v5157_v8 = vadd.f32 %v9097_v33, %v2332_v52  ;;  %v6780_v0 = vpop.f32.mrb[30].mxu0 }
 0x1f4   : > { %5293 = vst [vmem:[%s9125_s29 + $0x3c0] sm:$0xff] %v5165_v58  ;;  %v5169_v41 = vadd.f32 %v6780_v0, %v9097_v33  ;;  %v2335_v3 = vpop.f32.mrb[31].mxu0 }
 0x1f5   : > { %5285 = vst [vmem:[%s9125_s29 + $0x380] sm:$0xff] %v5157_v8  ;;  %v5161_v14 = vadd.f32 %v9097_v33, %v2335_v3 }
 0x1f6   : > { %5297 = vst [vmem:[%s9125_s29 + $0x3e0] sm:$0xff] %v5169_v41  ;;  %7238 = vmatmul.mubr.msk.bf16.gmra.mrb[40].mxu0 %vm9080_vm0, %v9075_v29 }
 0x1f7   : > { %5289 = vst [vmem:[%s9125_s29 + $0x3a0] sm:$0xff] %v5161_v14  ;;  %7142 = vmatmul.mubr.msk.bf16.gmra.mrb[40].mxu1 %vm9066_vm12, %v9059_v24  ;;  %7241 = vmatprep.mubr.msk.bf16.mxu0 %vm9818_vm10, %v9136_v32 }
 0x1f8   : > { %7145 = vmatprep.mubr.msk.bf16.mxu1 %vm9080_vm0, %v9075_v29 }
 0x1fe   : > { %7242 = vmatmul.mubr.msk.bf16.gmra.mrb[44].mxu0 %vm9819_vm2, %v9149_v56 }
 0x1ff   : > { %7146 = vmatmul.mubr.msk.bf16.gmra.mrb[44].mxu1 %vm9818_vm10, %v9136_v32  ;;  %7245 = vmatprep.mubr.msk.bf16.mxu0 %vm9820_vm6, %v9203_v18 }
 0x200   : > { %7149 = vmatprep.mubr.msk.bf16.mxu1 %vm9819_vm2, %v9149_v56 }
 0x206   : > { %7246 = vmatmul.mubr.msk.bf16.gmra.mrb[48].mxu0 %vm9821_vm14, %v9213_v21 }
 0x207   : > { %7150 = vmatmul.mubr.msk.bf16.gmra.mrb[48].mxu1 %vm9820_vm6, %v9203_v18  ;;  %7249 = vmatprep.mubr.msk.bf16.mxu0 %vm9259_vm8, %v9255_v9 }
 0x208   : > { %7153 = vmatprep.mubr.msk.bf16.mxu1 %vm9821_vm14, %v9213_v21 }
 0x20e   : > { %7250 = vmatmul.mubr.msk.bf16.gmra.mrb[52].mxu0 %vm9272_vm1, %v9263_v49 }
 0x20f   : > { %7154 = vmatmul.mubr.msk.bf16.gmra.mrb[52].mxu1 %vm9259_vm8, %v9255_v9  ;;  %7253 = vmatprep.mubr.msk.bf16.mxu0 %vm9304_vm11, %v9300_v25 }
 0x210   : > { %7157 = vmatprep.mubr.msk.bf16.mxu1 %vm9272_vm1, %v9263_v49 }
 0x216   : > { %7254 = vmatmul.mubr.msk.bf16.gmra.mrb[56].mxu0 %vm9314_vm7, %v9308_v38 }
 0x217   : > { %7158 = vmatmul.mubr.msk.bf16.gmra.mrb[56].mxu1 %vm9304_vm11, %v9300_v25  ;;  %7257 = vmatprep.mubr.msk.bf16.mxu0 %vm9341_vm3, %v9337_v1 }
 0x218   : > { %7161 = vmatprep.mubr.msk.bf16.mxu1 %vm9314_vm7, %v9308_v38 }
 0x21e   : > { %7258 = vmatmul.mubr.bf16.gmra.mrb[60].mxu0 %v7824_v19 }
 0x21f   : > { %7162 = vmatmul.mubr.msk.bf16.gmra.mrb[60].mxu1 %vm9341_vm3, %v9337_v1 }
 0x23a   : > { %v6943_v24 = vpop.f32.mrb[0].mxu1 }
 0x23b   : > { %v5055_v28 = vadd.f32 %v6943_v24, %v9477_v27  ;;  %v3188_v29 = vpop.f32.mrb[1].mxu1 }
 0x23c   : > { %v5047_v54 = vadd.f32 %v9477_v27, %v3188_v29  ;;  %v6944_v33 = vpop.f32.mrb[2].mxu1 }
 0x23d   : > { %5183 = vst [vmem:[%s9125_s29 + $0x50] sm:$0xff] %v5055_v28  ;;  %v5059_v19 = vadd.f32 %v6944_v33, %v9477_v27  ;;  %v3191_v32 = vpop.f32.mrb[3].mxu1  ;;  %v5031_v33 = vsub.s32 1, %v7871_v7 }
 0x23e   : > { %5175 = vst [vmem:[%s9125_s29 + $0x10] sm:$0xff] %v5047_v54  ;;  %v5051_v47 = vadd.f32 %v9477_v27, %v3191_v32  ;;  %v5039_v54 = vsub.s32 3, %v7871_v7 }
 0x23f   : > { %5187 = vst [vmem:[%s9125_s29 + $0x70] sm:$0xff] %v5059_v19  ;;  %v9549_v32 = vrot.slane %v9073_v36, %v5031_v33 }
 0x240   : > { %5179 = vst [vmem:[%s9125_s29 + $0x30] sm:$0xff] %v5051_v47  ;;  %v9546_v19 = vrot.slane %v9073_v36, %v5039_v54 }
 0x242   : > { %v6947_v56 = vpop.f32.mrb[4].mxu1 }
 0x243   : > { %v5071_v37 = vadd.f32 %v6947_v56, %v9477_v27  ;;  %v3204_v18 = vpop.f32.mrb[5].mxu1 }
 0x244   : > { %v5063_v20 = vadd.f32 %v9477_v27, %v3204_v18  ;;  %v6948_v21 = vpop.f32.mrb[6].mxu1 }
 0x245   : > { %5199 = vst [vmem:[%s9125_s29 + $0xd0] sm:$0xff] %v5071_v37  ;;  %v5075_v16 = vadd.f32 %v6948_v21, %v9477_v27  ;;  %v3207_v9 = vpop.f32.mrb[7].mxu1 }
 0x246   : > { %5191 = vst [vmem:[%s9125_s29 + $0x90] sm:$0xff] %v5063_v20  ;;  %v5067_v63 = vadd.f32 %v9477_v27, %v3207_v9 }
 0x247   : > { %5203 = vst [vmem:[%s9125_s29 + $0xf0] sm:$0xff] %v5075_v16 }
 0x248   : > { %5195 = vst [vmem:[%s9125_s29 + $0xb0] sm:$0xff] %v5067_v63 }
 0x24a   : > { %v6951_v49 = vpop.f32.mrb[8].mxu1 }
 0x24b   : > { %v5087_v11 = vadd.f32 %v6951_v49, %v9477_v27  ;;  %v3220_v25 = vpop.f32.mrb[9].mxu1 }
 0x24c   : > { %v5079_v51 = vadd.f32 %v9477_v27, %v3220_v25  ;;  %v6952_v38 = vpop.f32.mrb[10].mxu1 }
 0x24d   : > { %5215 = vst [vmem:[%s9125_s29 + $0x150] sm:$0xff] %v5087_v11  ;;  %v5091_v39 = vadd.f32 %v6952_v38, %v9477_v27  ;;  %v3223_v45 = vpop.f32.mrb[11].mxu1 }
 0x24e   : > { %5207 = vst [vmem:[%s9125_s29 + $0x110] sm:$0xff] %v5079_v51  ;;  %v5083_v62 = vadd.f32 %v9477_v27, %v3223_v45 }
 0x24f   : > { %5219 = vst [vmem:[%s9125_s29 + $0x170] sm:$0xff] %v5091_v39 }
 0x250   : > { %5211 = vst [vmem:[%s9125_s29 + $0x130] sm:$0xff] %v5083_v62 }
 0x252   : > { %v6955_v31 = vpop.f32.mrb[12].mxu1 }
 0x253   : > { %v5103_v50 = vadd.f32 %v6955_v31, %v9477_v27  ;;  %v3236_v6 = vpop.f32.mrb[13].mxu1 }
 0x254   : > { %v5095_v34 = vadd.f32 %v9477_v27, %v3236_v6  ;;  %v6956_v57 = vpop.f32.mrb[14].mxu1 }
 0x255   : > { %5231 = vst [vmem:[%s9125_s29 + $0x1d0] sm:$0xff] %v5103_v50  ;;  %v5107_v1 = vadd.f32 %v6956_v57, %v9477_v27  ;;  %v3239_v10 = vpop.f32.mrb[15].mxu1 }
 0x256   : > { %5223 = vst [vmem:[%s9125_s29 + $0x190] sm:$0xff] %v5095_v34  ;;  %v5099_v59 = vadd.f32 %v9477_v27, %v3239_v10 }
 0x257   : > { %5235 = vst [vmem:[%s9125_s29 + $0x1f0] sm:$0xff] %v5107_v1 }
 0x258   : > { %5227 = vst [vmem:[%s9125_s29 + $0x1b0] sm:$0xff] %v5099_v59 }
 0x25a   : > { %v6959_v23 = vpop.f32.mrb[16].mxu1 }
 0x25b   : > { %v5119_v12 = vadd.f32 %v6959_v23, %v9477_v27  ;;  %v3252_v46 = vpop.f32.mrb[17].mxu1 }
 0x25c   : > { %v5111_v4 = vadd.f32 %v9477_v27, %v3252_v46  ;;  %v6960_v48 = vpop.f32.mrb[18].mxu1 }
 0x25d   : > { %5247 = vst [vmem:[%s9125_s29 + $0x250] sm:$0xff] %v5119_v12  ;;  %v5123_v60 = vadd.f32 %v6960_v48, %v9477_v27  ;;  %v3255_v5 = vpop.f32.mrb[19].mxu1 }
 0x25e   : > { %5239 = vst [vmem:[%s9125_s29 + $0x210] sm:$0xff] %v5111_v4  ;;  %v5115_v26 = vadd.f32 %v9477_v27, %v3255_v5 }
 0x25f   : > { %5251 = vst [vmem:[%s9125_s29 + $0x270] sm:$0xff] %v5123_v60 }
 0x260   : > { %5243 = vst [vmem:[%s9125_s29 + $0x230] sm:$0xff] %v5115_v26 }
 0x262   : > { %v6963_v17 = vpop.f32.mrb[20].mxu1 }
 0x263   : > { %v5135_v35 = vadd.f32 %v6963_v17, %v9477_v27  ;;  %v3268_v43 = vpop.f32.mrb[21].mxu1 }
 0x264   : > { %v5127_v44 = vadd.f32 %v9477_v27, %v3268_v43  ;;  %v6964_v53 = vpop.f32.mrb[22].mxu1 }
 0x265   : > { %5263 = vst [vmem:[%s9125_s29 + $0x2d0] sm:$0xff] %v5135_v35  ;;  %v5139_v2 = vadd.f32 %v6964_v53, %v9477_v27  ;;  %v3271_v22 = vpop.f32.mrb[23].mxu1 }
 0x266   : > { %5255 = vst [vmem:[%s9125_s29 + $0x290] sm:$0xff] %v5127_v44  ;;  %v5131_v55 = vadd.f32 %v9477_v27, %v3271_v22 }
 0x267   : > { %5267 = vst [vmem:[%s9125_s29 + $0x2f0] sm:$0xff] %v5139_v2 }
 0x268   : > { %5259 = vst [vmem:[%s9125_s29 + $0x2b0] sm:$0xff] %v5131_v55 }
 0x26a   : > { %v6967_v40 = vpop.f32.mrb[24].mxu1 }
 0x26b   : > { %v5151_v13 = vadd.f32 %v6967_v40, %v9477_v27  ;;  %v3284_v15 = vpop.f32.mrb[25].mxu1 }
 0x26c   : > { %v5143_v61 = vadd.f32 %v9477_v27, %v3284_v15  ;;  %v6968_v30 = vpop.f32.mrb[26].mxu1 }
 0x26d   : > { %5279 = vst [vmem:[%s9125_s29 + $0x350] sm:$0xff] %v5151_v13  ;;  %v5155_v58 = vadd.f32 %v6968_v30, %v9477_v27  ;;  %v3287_v52 = vpop.f32.mrb[27].mxu1 }
 0x26e   : > { %5271 = vst [vmem:[%s9125_s29 + $0x310] sm:$0xff] %v5143_v61  ;;  %v5147_v8 = vadd.f32 %v9477_v27, %v3287_v52 }
 0x26f   : > { %5283 = vst [vmem:[%s9125_s29 + $0x370] sm:$0xff] %v5155_v58 }
 0x270   : > { %5275 = vst [vmem:[%s9125_s29 + $0x330] sm:$0xff] %v5147_v8 }
 0x272   : > { %v6971_v0 = vpop.f32.mrb[28].mxu1 }
 0x273   : > { %v5167_v41 = vadd.f32 %v6971_v0, %v9477_v27  ;;  %v3300_v3 = vpop.f32.mrb[29].mxu1 }
 0x274   : > { %v5159_v14 = vadd.f32 %v9477_v27, %v3300_v3  ;;  %v6972_v42 = vpop.f32.mrb[30].mxu1 }
 0x275   : > { %5295 = vst [vmem:[%s9125_s29 + $0x3d0] sm:$0xff] %v5167_v41  ;;  %v5171_v24 = vadd.f32 %v6972_v42, %v9477_v27  ;;  %v3303_v28 = vpop.f32.mrb[31].mxu1 }
 0x276   : > { %5287 = vst [vmem:[%s9125_s29 + $0x390] sm:$0xff] %v5159_v14  ;;  %v5163_v29 = vadd.f32 %v9477_v27, %v3303_v28 }
 0x277   : > { %5299 = vst [vmem:[%s9125_s29 + $0x3f0] sm:$0xff] %v5171_v24 }
 0x278   : > { %5291 = vst [vmem:[%s9125_s29 + $0x3b0] sm:$0xff] %v5163_v29 }
 0x2b9   : > { %v7231_v47 = vpop.f32.mrb[32].mxu0 }
 0x2ba   : > { %v7135_v56 = vpop.f32.mrb[32].mxu1  ;;  %v5056_v37 = vadd.f32 %v7231_v47, %v9546_v19  ;;  %v4864_v27 = vpop.f32.mrb[33].mxu0 }
 0x2bb   : > { %v5054_v18 = vadd.f32 %v7135_v56, %v9549_v32  ;;  %v4348_v20 = vpop.f32.mrb[33].mxu1  ;;  %v5048_v7 = vadd.f32 %v9546_v19, %v4864_v27  ;;  %v7232_v21 = vpop.f32.mrb[34].mxu0 }
 0x2bc   : > { %5184 = vst [vmem:[%s9125_s29 + $0x58] sm:$0xff] %v5056_v37  ;;  %v5046_v36 = vadd.f32 %v9549_v32, %v4348_v20  ;;  %v7136_v16 = vpop.f32.mrb[34].mxu1  ;;  %v5060_v9 = vadd.f32 %v7232_v21, %v9546_v19  ;;  %v4867_v63 = vpop.f32.mrb[35].mxu0 }
 0x2bd   : > { %5182 = vst [vmem:[%s9125_s29 + $0x48] sm:$0xff] %v5054_v18  ;;  %5176 = vst [vmem:[%s9125_s29 + $0x18] sm:$0xff] %v5048_v7  ;;  %v5058_v49 = vadd.f32 %v7136_v16, %v9549_v32  ;;  %v4351_v11 = vpop.f32.mrb[35].mxu1  ;;  %v5052_v25 = vadd.f32 %v9546_v19, %v4867_v63 }
 0x2be   : > { %5174 = vst [vmem:[%s9125_s29 + $0x8] sm:$0xff] %v5046_v36  ;;  %5188 = vst [vmem:[%s9125_s29 + $0x78] sm:$0xff] %v5060_v9  ;;  %v5050_v51 = vadd.f32 %v9549_v32, %v4351_v11 }
 0x2bf   : > { %5186 = vst [vmem:[%s9125_s29 + $0x68] sm:$0xff] %v5058_v49  ;;  %5180 = vst [vmem:[%s9125_s29 + $0x38] sm:$0xff] %v5052_v25 }
 0x2c0   : > { %5178 = vst [vmem:[%s9125_s29 + $0x28] sm:$0xff] %v5050_v51 }
 0x2c1   : > { %v7235_v38 = vpop.f32.mrb[36].mxu0 }
 0x2c2   : > { %v7139_v39 = vpop.f32.mrb[36].mxu1  ;;  %v5072_v45 = vadd.f32 %v7235_v38, %v9546_v19  ;;  %v4880_v62 = vpop.f32.mrb[37].mxu0 }
 0x2c3   : > { %v5070_v31 = vadd.f32 %v7139_v39, %v9549_v32  ;;  %v4364_v50 = vpop.f32.mrb[37].mxu1  ;;  %v5064_v6 = vadd.f32 %v9546_v19, %v4880_v62  ;;  %v7236_v34 = vpop.f32.mrb[38].mxu0 }
 0x2c4   : > { %5200 = vst [vmem:[%s9125_s29 + $0xd8] sm:$0xff] %v5072_v45  ;;  %v5062_v57 = vadd.f32 %v9549_v32, %v4364_v50  ;;  %v7140_v1 = vpop.f32.mrb[38].mxu1  ;;  %v5076_v10 = vadd.f32 %v7236_v34, %v9546_v19  ;;  %v4883_v59 = vpop.f32.mrb[39].mxu0 }
 0x2c5   : > { %5198 = vst [vmem:[%s9125_s29 + $0xc8] sm:$0xff] %v5070_v31  ;;  %5192 = vst [vmem:[%s9125_s29 + $0x98] sm:$0xff] %v5064_v6  ;;  %v5074_v23 = vadd.f32 %v7140_v1, %v9549_v32  ;;  %v4367_v12 = vpop.f32.mrb[39].mxu1  ;;  %v5068_v46 = vadd.f32 %v9546_v19, %v4883_v59 }
 0x2c6   : > { %5190 = vst [vmem:[%s9125_s29 + $0x88] sm:$0xff] %v5062_v57  ;;  %5204 = vst [vmem:[%s9125_s29 + $0xf8] sm:$0xff] %v5076_v10  ;;  %v5066_v4 = vadd.f32 %v9549_v32, %v4367_v12 }
 0x2c7   : > { %5202 = vst [vmem:[%s9125_s29 + $0xe8] sm:$0xff] %v5074_v23  ;;  %5196 = vst [vmem:[%s9125_s29 + $0xb8] sm:$0xff] %v5068_v46 }
 0x2c8   : > { %5194 = vst [vmem:[%s9125_s29 + $0xa8] sm:$0xff] %v5066_v4 }
 0x2c9   : > { %v7239_v48 = vpop.f32.mrb[40].mxu0 }
 0x2ca   : > { %v7143_v60 = vpop.f32.mrb[40].mxu1  ;;  %v5088_v5 = vadd.f32 %v7239_v48, %v9546_v19  ;;  %v4896_v26 = vpop.f32.mrb[41].mxu0 }
 0x2cb   : > { %v5086_v17 = vadd.f32 %v7143_v60, %v9549_v32  ;;  %v4380_v35 = vpop.f32.mrb[41].mxu1  ;;  %v5080_v43 = vadd.f32 %v9546_v19, %v4896_v26  ;;  %v7240_v44 = vpop.f32.mrb[42].mxu0 }
 0x2cc   : > { %5216 = vst [vmem:[%s9125_s29 + $0x158] sm:$0xff] %v5088_v5  ;;  %v5078_v53 = vadd.f32 %v9549_v32, %v4380_v35  ;;  %v7144_v2 = vpop.f32.mrb[42].mxu1  ;;  %v5092_v22 = vadd.f32 %v7240_v44, %v9546_v19  ;;  %v4899_v55 = vpop.f32.mrb[43].mxu0 }
 0x2cd   : > { %5214 = vst [vmem:[%s9125_s29 + $0x148] sm:$0xff] %v5086_v17  ;;  %5208 = vst [vmem:[%s9125_s29 + $0x118] sm:$0xff] %v5080_v43  ;;  %v5090_v40 = vadd.f32 %v7144_v2, %v9549_v32  ;;  %v4383_v13 = vpop.f32.mrb[43].mxu1  ;;  %v5084_v15 = vadd.f32 %v9546_v19, %v4899_v55 }
 0x2ce   : > { %5206 = vst [vmem:[%s9125_s29 + $0x108] sm:$0xff] %v5078_v53  ;;  %5220 = vst [vmem:[%s9125_s29 + $0x178] sm:$0xff] %v5092_v22  ;;  %v5082_v61 = vadd.f32 %v9549_v32, %v4383_v13 }
 0x2cf   : > { %5218 = vst [vmem:[%s9125_s29 + $0x168] sm:$0xff] %v5090_v40  ;;  %5212 = vst [vmem:[%s9125_s29 + $0x138] sm:$0xff] %v5084_v15 }
 0x2d0   : > { %5210 = vst [vmem:[%s9125_s29 + $0x128] sm:$0xff] %v5082_v61 }
 0x2d1   : > { %v7243_v30 = vpop.f32.mrb[44].mxu0 }
 0x2d2   : > { %v7147_v58 = vpop.f32.mrb[44].mxu1  ;;  %v5104_v52 = vadd.f32 %v7243_v30, %v9546_v19  ;;  %v4912_v8 = vpop.f32.mrb[45].mxu0 }
 0x2d3   : > { %v5102_v0 = vadd.f32 %v7147_v58, %v9549_v32  ;;  %v4396_v41 = vpop.f32.mrb[45].mxu1  ;;  %v5096_v3 = vadd.f32 %v9546_v19, %v4912_v8  ;;  %v7244_v14 = vpop.f32.mrb[46].mxu0 }
 0x2d4   : > { %5232 = vst [vmem:[%s9125_s29 + $0x1d8] sm:$0xff] %v5104_v52  ;;  %v5094_v42 = vadd.f32 %v9549_v32, %v4396_v41  ;;  %v7148_v24 = vpop.f32.mrb[46].mxu1  ;;  %v5108_v28 = vadd.f32 %v7244_v14, %v9546_v19  ;;  %v4915_v29 = vpop.f32.mrb[47].mxu0 }
 0x2d5   : > { %5230 = vst [vmem:[%s9125_s29 + $0x1c8] sm:$0xff] %v5102_v0  ;;  %5224 = vst [vmem:[%s9125_s29 + $0x198] sm:$0xff] %v5096_v3  ;;  %v5106_v54 = vadd.f32 %v7148_v24, %v9549_v32  ;;  %v4399_v33 = vpop.f32.mrb[47].mxu1  ;;  %v5100_v47 = vadd.f32 %v9546_v19, %v4915_v29 }
 0x2d6   : > { %5222 = vst [vmem:[%s9125_s29 + $0x188] sm:$0xff] %v5094_v42  ;;  %5236 = vst [vmem:[%s9125_s29 + $0x1f8] sm:$0xff] %v5108_v28  ;;  %v5098_v56 = vadd.f32 %v9549_v32, %v4399_v33 }
 0x2d7   : > { %5234 = vst [vmem:[%s9125_s29 + $0x1e8] sm:$0xff] %v5106_v54  ;;  %5228 = vst [vmem:[%s9125_s29 + $0x1b8] sm:$0xff] %v5100_v47 }
 0x2d8   : > { %5226 = vst [vmem:[%s9125_s29 + $0x1a8] sm:$0xff] %v5098_v56 }
 0x2d9   : > { %v7247_v37 = vpop.f32.mrb[48].mxu0 }
 0x2da   : > { %v7151_v27 = vpop.f32.mrb[48].mxu1  ;;  %v5120_v18 = vadd.f32 %v7247_v37, %v9546_v19  ;;  %v4928_v20 = vpop.f32.mrb[49].mxu0 }
 0x2db   : > { %v5118_v7 = vadd.f32 %v7151_v27, %v9549_v32  ;;  %v4412_v21 = vpop.f32.mrb[49].mxu1  ;;  %v5112_v36 = vadd.f32 %v9546_v19, %v4928_v20  ;;  %v7248_v16 = vpop.f32.mrb[50].mxu0 }
 0x2dc   : > { %5248 = vst [vmem:[%s9125_s29 + $0x258] sm:$0xff] %v5120_v18  ;;  %v5110_v9 = vadd.f32 %v9549_v32, %v4412_v21  ;;  %v7152_v63 = vpop.f32.mrb[50].mxu1  ;;  %v5124_v49 = vadd.f32 %v7248_v16, %v9546_v19  ;;  %v4931_v11 = vpop.f32.mrb[51].mxu0 }
 0x2dd   : > { %5246 = vst [vmem:[%s9125_s29 + $0x248] sm:$0xff] %v5118_v7  ;;  %5240 = vst [vmem:[%s9125_s29 + $0x218] sm:$0xff] %v5112_v36  ;;  %v5122_v25 = vadd.f32 %v7152_v63, %v9549_v32  ;;  %v4415_v51 = vpop.f32.mrb[51].mxu1  ;;  %v5116_v38 = vadd.f32 %v9546_v19, %v4931_v11 }
 0x2de   : > { %5238 = vst [vmem:[%s9125_s29 + $0x208] sm:$0xff] %v5110_v9  ;;  %5252 = vst [vmem:[%s9125_s29 + $0x278] sm:$0xff] %v5124_v49  ;;  %v5114_v39 = vadd.f32 %v9549_v32, %v4415_v51 }
 0x2df   : > { %5250 = vst [vmem:[%s9125_s29 + $0x268] sm:$0xff] %v5122_v25  ;;  %5244 = vst [vmem:[%s9125_s29 + $0x238] sm:$0xff] %v5116_v38 }
 0x2e0   : > { %5242 = vst [vmem:[%s9125_s29 + $0x228] sm:$0xff] %v5114_v39 }
 0x2e1   : > { %v7251_v45 = vpop.f32.mrb[52].mxu0 }
 0x2e2   : > { %v7155_v62 = vpop.f32.mrb[52].mxu1  ;;  %v5136_v31 = vadd.f32 %v7251_v45, %v9546_v19  ;;  %v4944_v50 = vpop.f32.mrb[53].mxu0 }
 0x2e3   : > { %v5134_v6 = vadd.f32 %v7155_v62, %v9549_v32  ;;  %v4428_v34 = vpop.f32.mrb[53].mxu1  ;;  %v5128_v57 = vadd.f32 %v9546_v19, %v4944_v50  ;;  %v7252_v1 = vpop.f32.mrb[54].mxu0 }
 0x2e4   : > { %5264 = vst [vmem:[%s9125_s29 + $0x2d8] sm:$0xff] %v5136_v31  ;;  %v5126_v10 = vadd.f32 %v9549_v32, %v4428_v34  ;;  %v7156_v59 = vpop.f32.mrb[54].mxu1  ;;  %v5140_v23 = vadd.f32 %v7252_v1, %v9546_v19  ;;  %v4947_v12 = vpop.f32.mrb[55].mxu0 }
 0x2e5   : > { %5262 = vst [vmem:[%s9125_s29 + $0x2c8] sm:$0xff] %v5134_v6  ;;  %5256 = vst [vmem:[%s9125_s29 + $0x298] sm:$0xff] %v5128_v57  ;;  %v5138_v46 = vadd.f32 %v7156_v59, %v9549_v32  ;;  %v4431_v4 = vpop.f32.mrb[55].mxu1  ;;  %v5132_v48 = vadd.f32 %v9546_v19, %v4947_v12 }
 0x2e6   : > { %5254 = vst [vmem:[%s9125_s29 + $0x288] sm:$0xff] %v5126_v10  ;;  %5268 = vst [vmem:[%s9125_s29 + $0x2f8] sm:$0xff] %v5140_v23  ;;  %v5130_v60 = vadd.f32 %v9549_v32, %v4431_v4 }
 0x2e7   : > { %5266 = vst [vmem:[%s9125_s29 + $0x2e8] sm:$0xff] %v5138_v46  ;;  %5260 = vst [vmem:[%s9125_s29 + $0x2b8] sm:$0xff] %v5132_v48 }
 0x2e8   : > { %5258 = vst [vmem:[%s9125_s29 + $0x2a8] sm:$0xff] %v5130_v60 }
 0x2e9   : > { %v7255_v5 = vpop.f32.mrb[56].mxu0 }
 0x2ea   : > { %v7159_v26 = vpop.f32.mrb[56].mxu1  ;;  %v5152_v17 = vadd.f32 %v7255_v5, %v9546_v19  ;;  %v4960_v35 = vpop.f32.mrb[57].mxu0 }
 0x2eb   : > { %v5150_v43 = vadd.f32 %v7159_v26, %v9549_v32  ;;  %v4444_v44 = vpop.f32.mrb[57].mxu1  ;;  %v5144_v53 = vadd.f32 %v9546_v19, %v4960_v35  ;;  %v7256_v2 = vpop.f32.mrb[58].mxu0 }
 0x2ec   : > { %5280 = vst [vmem:[%s9125_s29 + $0x358] sm:$0xff] %v5152_v17  ;;  %v5142_v22 = vadd.f32 %v9549_v32, %v4444_v44  ;;  %v7160_v55 = vpop.f32.mrb[58].mxu1  ;;  %v5156_v40 = vadd.f32 %v7256_v2, %v9546_v19  ;;  %v4963_v13 = vpop.f32.mrb[59].mxu0 }
 0x2ed   : > { %5278 = vst [vmem:[%s9125_s29 + $0x348] sm:$0xff] %v5150_v43  ;;  %5272 = vst [vmem:[%s9125_s29 + $0x318] sm:$0xff] %v5144_v53  ;;  %v5154_v15 = vadd.f32 %v7160_v55, %v9549_v32  ;;  %v4447_v61 = vpop.f32.mrb[59].mxu1  ;;  %v5148_v30 = vadd.f32 %v9546_v19, %v4963_v13 }
 0x2ee   : > { %5270 = vst [vmem:[%s9125_s29 + $0x308] sm:$0xff] %v5142_v22  ;;  %5284 = vst [vmem:[%s9125_s29 + $0x378] sm:$0xff] %v5156_v40  ;;  %v5146_v58 = vadd.f32 %v9549_v32, %v4447_v61 }
 0x2ef   : > { %5282 = vst [vmem:[%s9125_s29 + $0x368] sm:$0xff] %v5154_v15  ;;  %5276 = vst [vmem:[%s9125_s29 + $0x338] sm:$0xff] %v5148_v30 }
 0x2f0   : > { %5274 = vst [vmem:[%s9125_s29 + $0x328] sm:$0xff] %v5146_v58 }
 0x2f1   : > { %v7259_v52 = vpop.f32.mrb[60].mxu0 }
 0x2f2   : > { %v7163_v8 = vpop.f32.mrb[60].mxu1  ;;  %v5168_v0 = vadd.f32 %v7259_v52, %v9546_v19  ;;  %v4976_v41 = vpop.f32.mrb[61].mxu0 }
 0x2f3   : > { %v5166_v3 = vadd.f32 %v7163_v8, %v9549_v32  ;;  %v4460_v14 = vpop.f32.mrb[61].mxu1  ;;  %v5160_v42 = vadd.f32 %v9546_v19, %v4976_v41  ;;  %v7260_v24 = vpop.f32.mrb[62].mxu0 }
 0x2f4   : > { %5296 = vst [vmem:[%s9125_s29 + $0x3d8] sm:$0xff] %v5168_v0  ;;  %v5158_v28 = vadd.f32 %v9549_v32, %v4460_v14  ;;  %v7164_v29 = vpop.f32.mrb[62].mxu1  ;;  %v5172_v54 = vadd.f32 %v7260_v24, %v9546_v19  ;;  %v4979_v33 = vpop.f32.mrb[63].mxu0 }
 0x2f5   : > { %5294 = vst [vmem:[%s9125_s29 + $0x3c8] sm:$0xff] %v5166_v3  ;;  %5288 = vst [vmem:[%s9125_s29 + $0x398] sm:$0xff] %v5160_v42  ;;  %v5170_v47 = vadd.f32 %v7164_v29, %v9549_v32  ;;  %v4463_v56 = vpop.f32.mrb[63].mxu1  ;;  %v5164_v37 = vadd.f32 %v9546_v19, %v4979_v33 }
 0x2f6   : > { %5286 = vst [vmem:[%s9125_s29 + $0x388] sm:$0xff] %v5158_v28  ;;  %5300 = vst [vmem:[%s9125_s29 + $0x3f8] sm:$0xff] %v5172_v54  ;;  %v5162_v27 = vadd.f32 %v9549_v32, %v4463_v56 }
 0x2f7   : > { %5298 = vst [vmem:[%s9125_s29 + $0x3e8] sm:$0xff] %v5170_v47  ;;  %5292 = vst [vmem:[%s9125_s29 + $0x3b8] sm:$0xff] %v5164_v37 }
 0x2f8   : > { %5290 = vst [vmem:[%s9125_s29 + $0x3a8] sm:$0xff] %v5162_v27 }
 0x2f9 PF: > { %s13_s12 = sadd.s32 1, %s7821_s12  }
 0x2fa   : > { %p10_p4 = scmp.ge.s32.totalorder %s13_s12, 4  }
 0x2fc   :  { %12 = sbr.rel (!%p10_p4) target bundleno = 1 (0x1), region = 77 }

</bundles_post_ra>
